<compile_context>
chip_gen: v7x
topology: tpu7x:2x2x1
jax: 0.10.0
libtpu: 0.0.40
codegen_flags: <defaults>
</compile_context>

<pallas_src>
import functools

import jax
import jax.numpy as jnp
from jax.experimental import pallas as pl
from jax.experimental.pallas import tpu as pltpu


def _round_up(n, m):
    return ((n + m - 1) // m) * m


def _mlp_kernel(x_ref, w1_ref, b1_ref, w2_ref, b2_ref, w3_ref, b3_ref, o_ref):
    """Fused 3-layer MLP: relu(x@W1+b1) -> relu(@W2+b2) -> @W3+b3."""
    x = x_ref[...]                                                   # bf16
    h1 = jnp.dot(x, w1_ref[...], preferred_element_type=jnp.float32) + b1_ref[...]
    h1 = jnp.maximum(h1, 0.0).astype(jnp.bfloat16)
    h2 = jnp.dot(h1, w2_ref[...], preferred_element_type=jnp.float32) + b2_ref[...]
    h2 = jnp.maximum(h2, 0.0).astype(jnp.bfloat16)
    out = jnp.dot(h2, w3_ref[...], preferred_element_type=jnp.float32) + b3_ref[...]
    o_ref[...] = out.astype(o_ref.dtype)


@functools.partial(jax.jit, static_argnames=("tile_b",))
def mnist_2nn_forward(x, params, tile_b=512):
    """x: (B, 1, 28, 28) float32 NCHW. Returns logits (B, n_cls) float32."""
    w1, b1, w2, b2, w3, b3 = params          # W stored (in, out); b stored (1, out)
    B = x.shape[0]
    d_in = w1.shape[0]                       # 784
    h = w1.shape[1]                          # 200
    n_cls = w3.shape[1]

    hp = _round_up(h, 128)                   # 200 -> 256 (lane-aligned hidden)
    n_out = _round_up(n_cls, 128)            # n_cls -> 128 (lane-dense output)

    # Effective batch tile: as large as requested but never bigger than the
    # (8-rounded) batch; batch is zero-padded to a multiple of the tile.
    tile = min(tile_b, _round_up(B, 8))
    Bp = _round_up(B, tile)
    grid = (Bp // tile,)

    # Flatten exactly like torch's x.view(-1, 784), pad batch, cast to bf16.
    x2 = x.reshape(B, d_in)
    x2 = jnp.pad(x2, ((0, Bp - B), (0, 0))).astype(jnp.bfloat16)

    # Zero-pad weights/biases to lane-aligned sizes (numerically exact:
    # zero columns produce zero activations, zero rows contribute nothing).
    w1p = jnp.pad(w1, ((0, 0), (0, hp - h))).astype(jnp.bfloat16)          # (784, 256)
    b1p = jnp.pad(b1, ((0, 0), (0, hp - h)))                                # (1, 256) f32
    w2p = jnp.pad(w2, ((0, hp - h), (0, hp - h))).astype(jnp.bfloat16)      # (256, 256)
    b2p = jnp.pad(b2, ((0, 0), (0, hp - h)))                                # (1, 256) f32
    w3p = jnp.pad(w3, ((0, hp - h), (0, n_out - n_cls))).astype(jnp.bfloat16)  # (256, 128)
    b3p = jnp.pad(b3, ((0, 0), (0, n_out - n_cls)))                         # (1, 128) f32

    resident = lambda i: (0, 0)  # weights/biases stay in VMEM for every batch tile

    out_padded = pl.pallas_call(
        _mlp_kernel,
        out_shape=jax.ShapeDtypeStruct((Bp, n_out), jnp.float32),
        grid_spec=pltpu.PrefetchScalarGridSpec(
            num_scalar_prefetch=0,
            grid=grid,
            in_specs=[
                pl.BlockSpec((tile, d_in), lambda i: (i, 0)),   # x tile (streams)
                pl.BlockSpec((d_in, hp), resident),             # W1
                pl.BlockSpec((1, hp), resident),                # b1
                pl.BlockSpec((hp, hp), resident),               # W2
                pl.BlockSpec((1, hp), resident),                # b2
                pl.BlockSpec((hp, n_out), resident),            # W3
                pl.BlockSpec((1, n_out), resident),             # b3
            ],
            out_specs=pl.BlockSpec((tile, n_out), lambda i: (i, 0)),
        ),
        compiler_params=pltpu.CompilerParams(
            dimension_semantics=("parallel",),   # batch tiles shard across TCs (v7x)
        ),
    )(x2, w1p, b1p, w2p, b2p, w3p, b3p)

    # Slice the zero-padded batch rows and logit lanes back off.
    return out_padded[:B, :n_cls]


def init_params(key, n_cls):
    """Deterministic init mimicking nn.Linear default (U[-1/sqrt(fan_in), +])."""
    dims = [(1 * 28 * 28, 200), (200, 200), (200, n_cls)]
    params = []
    keys = jax.random.split(key, 2 * len(dims))
    for li, (fan_in, fan_out) in enumerate(dims):
        bound = 1.0 / (fan_in ** 0.5)
        # Stored already transposed to (in, out); b kept 2-D (1, out) for lanes.
        w = jax.random.uniform(
            keys[2 * li], (fan_in, fan_out), jnp.float32, -bound, bound
        )
        b = jax.random.uniform(
            keys[2 * li + 1], (1, fan_out), jnp.float32, -bound, bound
        )
        params += [w, b]
    return tuple(params)


def _reference(x, params):
    """Pure-JAX reference using the same bf16 operand casts / f32 accumulation."""
    w1, b1, w2, b2, w3, b3 = params
    h = x.reshape(x.shape[0], -1).astype(jnp.bfloat16)
    h = jnp.dot(h, w1.astype(jnp.bfloat16), preferred_element_type=jnp.float32) + b1
    h = jnp.maximum(h, 0.0).astype(jnp.bfloat16)
    h = jnp.dot(h, w2.astype(jnp.bfloat16), preferred_element_type=jnp.float32) + b2
    h = jnp.maximum(h, 0.0).astype(jnp.bfloat16)
    return jnp.dot(h, w3.astype(jnp.bfloat16), preferred_element_type=jnp.float32) + b3


if __name__ == "__main__":
    key = jax.random.PRNGKey(0)
    k_x, k_p = jax.random.split(key)

    # Non-multiple-of-tile batch on purpose: exercises batch padding + a grid
    # of >= 2 tiles (so both v7x TensorCores get work).
    B, n_cls = 250, 10
    x = jax.random.normal(k_x, (B, 1, 28, 28), jnp.float32)   # NCHW like PyTorch
    params = init_params(k_p, n_cls)

    out = mnist_2nn_forward(x, params, tile_b=128)
    out = jax.block_until_ready(out)

    ref = _reference(x, params)
    assert out.shape == (B, n_cls)
    assert jnp.allclose(out, ref, atol=2e-3, rtol=2e-3), "mismatch vs reference"

    # TODO(synk): 'Linear', 'emnist_NN', 'LeNet' and 'ResNet18' branches
    # (conv/pool/groupnorm) not implemented here; this covers 'mnist_2NN'.
    print("KERNEL_OK")
</pallas_src>

<mosaic_0001>
module attributes {stable_mosaic.version = 11 : i64} {
  func.func @_mlp_kernel(%arg0: i32, %arg1: memref<128x784xbf16, #tpu.memory_space<vmem>>, %arg2: memref<784x256xbf16, #tpu.memory_space<vmem>>, %arg3: memref<1x256xf32, #tpu.memory_space<vmem>>, %arg4: memref<256x256xbf16, #tpu.memory_space<vmem>>, %arg5: memref<1x256xf32, #tpu.memory_space<vmem>>, %arg6: memref<256x128xbf16, #tpu.memory_space<vmem>>, %arg7: memref<1x128xf32, #tpu.memory_space<vmem>>, %arg8: memref<128x128xf32, #tpu.memory_space<vmem>>) attributes {dimension_semantics = [#tpu.dimension_semantics<parallel>], iteration_bounds = array<i64: 2>, scalar_prefetch = 0 : i64, scratch_operands = 0 : i64, tpu.core_type = #tpu.core_type<tc>, window_params = [{transform_indices = @transform_0, window_bounds = array<i64: 128, 784>}, {pipeline_mode = #tpu.pipeline_mode<synchronous>, transform_indices = @transform_1, window_bounds = array<i64: 784, 256>}, {pipeline_mode = #tpu.pipeline_mode<synchronous>, transform_indices = @transform_2, window_bounds = array<i64: 1, 256>}, {pipeline_mode = #tpu.pipeline_mode<synchronous>, transform_indices = @transform_3, window_bounds = array<i64: 256, 256>}, {pipeline_mode = #tpu.pipeline_mode<synchronous>, transform_indices = @transform_4, window_bounds = array<i64: 1, 256>}, {pipeline_mode = #tpu.pipeline_mode<synchronous>, transform_indices = @transform_5, window_bounds = array<i64: 256, 128>}, {pipeline_mode = #tpu.pipeline_mode<synchronous>, transform_indices = @transform_6, window_bounds = array<i64: 1, 128>}, {transform_indices = @transform_7, window_bounds = array<i64: 128, 128>}]} {
    %c0 = arith.constant 0 : index
    %c0_0 = arith.constant 0 : index
    %0 = vector.load %arg1[%c0, %c0_0] : memref<128x784xbf16, #tpu.memory_space<vmem>>, vector<128x784xbf16>
    %c0_1 = arith.constant 0 : index
    %c0_2 = arith.constant 0 : index
    %1 = vector.load %arg2[%c0_1, %c0_2] : memref<784x256xbf16, #tpu.memory_space<vmem>>, vector<784x256xbf16>
    %cst = arith.constant dense<0.000000e+00> : vector<128x256xf32>
    %2 = tpu.matmul %0, %1, %cst {dimension_numbers = #tpu.dot_dimension_numbers<[1], [0], [0], [1], [0, 0, 1, 1], [], []>} : vector<128x784xbf16>, vector<784x256xbf16>, vector<128x256xf32> -> vector<128x256xf32>
    %c0_3 = arith.constant 0 : index
    %c0_4 = arith.constant 0 : index
    %3 = vector.load %arg3[%c0_3, %c0_4] : memref<1x256xf32, #tpu.memory_space<vmem>>, vector<1x256xf32>
    %4 = vector.broadcast %3 : vector<1x256xf32> to vector<128x256xf32>
    %5 = arith.addf %2, %4 : vector<128x256xf32>
    %cst_5 = arith.constant 0.000000e+00 : f32
    %6 = vector.broadcast %cst_5 : f32 to vector<128x256xf32>
    %7 = arith.maximumf %5, %6 : vector<128x256xf32>
    %8 = arith.truncf %7 : vector<128x256xf32> to vector<128x256xbf16>
    %c0_6 = arith.constant 0 : index
    %c0_7 = arith.constant 0 : index
    %9 = vector.load %arg4[%c0_6, %c0_7] : memref<256x256xbf16, #tpu.memory_space<vmem>>, vector<256x256xbf16>
    %cst_8 = arith.constant dense<0.000000e+00> : vector<128x256xf32>
    %10 = tpu.matmul %8, %9, %cst_8 {dimension_numbers = #tpu.dot_dimension_numbers<[1], [0], [0], [1], [0, 0, 1, 1], [], []>} : vector<128x256xbf16>, vector<256x256xbf16>, vector<128x256xf32> -> vector<128x256xf32>
    %c0_9 = arith.constant 0 : index
    %c0_10 = arith.constant 0 : index
    %11 = vector.load %arg5[%c0_9, %c0_10] : memref<1x256xf32, #tpu.memory_space<vmem>>, vector<1x256xf32>
    %12 = vector.broadcast %11 : vector<1x256xf32> to vector<128x256xf32>
    %13 = arith.addf %10, %12 : vector<128x256xf32>
    %cst_11 = arith.constant 0.000000e+00 : f32
    %14 = vector.broadcast %cst_11 : f32 to vector<128x256xf32>
    %15 = arith.maximumf %13, %14 : vector<128x256xf32>
    %16 = arith.truncf %15 : vector<128x256xf32> to vector<128x256xbf16>
    %c0_12 = arith.constant 0 : index
    %c0_13 = arith.constant 0 : index
    %17 = vector.load %arg6[%c0_12, %c0_13] : memref<256x128xbf16, #tpu.memory_space<vmem>>, vector<256x128xbf16>
    %cst_14 = arith.constant dense<0.000000e+00> : vector<128x128xf32>
    %18 = tpu.matmul %16, %17, %cst_14 {dimension_numbers = #tpu.dot_dimension_numbers<[1], [0], [0], [1], [0, 0, 1, 1], [], []>} : vector<128x256xbf16>, vector<256x128xbf16>, vector<128x128xf32> -> vector<128x128xf32>
    %c0_15 = arith.constant 0 : index
    %c0_16 = arith.constant 0 : index
    %19 = vector.load %arg7[%c0_15, %c0_16] : memref<1x128xf32, #tpu.memory_space<vmem>>, vector<1x128xf32>
    %20 = vector.broadcast %19 : vector<1x128xf32> to vector<128x128xf32>
    %21 = arith.addf %18, %20 : vector<128x128xf32>
    %c0_17 = arith.constant 0 : index
    %c0_18 = arith.constant 0 : index
    %22 = vector.load %arg8[%c0_17, %c0_18] : memref<128x128xf32, #tpu.memory_space<vmem>>, vector<128x128xf32>
    tpu.vector_store %arg8[%c0_17, %c0_18], %21 {strides = array<i32>} : memref<128x128xf32, #tpu.memory_space<vmem>>, vector<128x128xf32>,
    return
  }
  func.func @transform_0(%arg0: i32) -> (i32, i32) {
    %c0_i32 = arith.constant 0 : i32
    %c0_i32_0 = arith.constant 0 : i32
    return %arg0, %c0_i32 : i32, i32
  }
  func.func @transform_1(%arg0: i32) -> (i32, i32) {
    %c0_i32 = arith.constant 0 : i32
    %c0_i32_0 = arith.constant 0 : i32
    %c0_i32_1 = arith.constant 0 : i32
    return %c0_i32, %c0_i32_0 : i32, i32
  }
  func.func @transform_2(%arg0: i32) -> (i32, i32) {
    %c0_i32 = arith.constant 0 : i32
    %c0_i32_0 = arith.constant 0 : i32
    %c0_i32_1 = arith.constant 0 : i32
    return %c0_i32, %c0_i32_0 : i32, i32
  }
  func.func @transform_3(%arg0: i32) -> (i32, i32) {
    %c0_i32 = arith.constant 0 : i32
    %c0_i32_0 = arith.constant 0 : i32
    %c0_i32_1 = arith.constant 0 : i32
    return %c0_i32, %c0_i32_0 : i32, i32
  }
  func.func @transform_4(%arg0: i32) -> (i32, i32) {
    %c0_i32 = arith.constant 0 : i32
    %c0_i32_0 = arith.constant 0 : i32
    %c0_i32_1 = arith.constant 0 : i32
    return %c0_i32, %c0_i32_0 : i32, i32
  }
  func.func @transform_5(%arg0: i32) -> (i32, i32) {
    %c0_i32 = arith.constant 0 : i32
    %c0_i32_0 = arith.constant 0 : i32
    %c0_i32_1 = arith.constant 0 : i32
    return %c0_i32, %c0_i32_0 : i32, i32
  }
  func.func @transform_6(%arg0: i32) -> (i32, i32) {
    %c0_i32 = arith.constant 0 : i32
    %c0_i32_0 = arith.constant 0 : i32
    %c0_i32_1 = arith.constant 0 : i32
    return %c0_i32, %c0_i32_0 : i32, i32
  }
  func.func @transform_7(%arg0: i32) -> (i32, i32) {
    %c0_i32 = arith.constant 0 : i32
    %c0_i32_0 = arith.constant 0 : i32
    return %arg0, %c0_i32 : i32, i32
  }
}

</mosaic_0001>

<bundles_post_ra>
// kernel: mnist_2nn_forward.1
= control target key start
LH: loop header
LB: loop body
LE: loop exit
PB: predicated region body
PF: predicated region fallthrough
CT: control target
= control target key end

     0   :  { %s3188_s24 = smov 0   ;;  %s3914_s0 = inlined_call_operand.vmem [shape: bf16[256,784], index: 0, kind: input, shape index: {}]   ;;  %s3915_s1 = inlined_call_operand.vmem [shape: bf16[784,256], index: 1, kind: input, shape index: {}]   ;;  %s3916_s2 = inlined_call_operand.vmem [shape: f32[1,256], index: 2, kind: input, shape index: {}]   ;;  %s3917_s3 = inlined_call_operand.vmem [shape: bf16[256,256], index: 3, kind: input, shape index: {}]   ;;  %s3918_s4 = inlined_call_operand.vmem [shape: f32[1,256], index: 4, kind: input, shape index: {}]   ;;  %s3919_s5 = inlined_call_operand.vmem [shape: bf16[256,128], index: 5, kind: input, shape index: {}]   ;;  %s3920_s6 = inlined_call_operand.vmem [shape: f32[1,128], index: 6, kind: input, shape index: {}]   ;;  %s3921_s7 = inlined_call_operand.vmem [shape: f32[256,128], index: 7, kind: output, shape index: {}]  }
   0x1 LB: > { %s2424_s25 = sadd.s32 4294967295, %s3145_s24   ;;  %p2428_p0 = scmp.ge.s32.totalorder %s3145_s24, 1  ;;  %s3145_s24 = sphi %s3188_s24, %s17_s24  }
   0x2   : > { %p239_p1 = scmp.lt.s32.totalorder %s3145_s24, 3 }
   0x4   : > { %p240_p2 = pnand %p2428_p0, %p239_p1 }
   0x5   : > { %v2848_v0 = vld [vmem:[%s3915_s1 + $0x104] ss:$8 sps:$4 sm:$0xff] (!%p240_p2)   ;;  %v2850_v1 = vld [vmem:[%s3915_s1 + $0x100] ss:$8 sps:$4 sm:$0xff] (!%p240_p2)   ;;  %v2851_v2 = vld [vmem:[%s3915_s1 + $0x114] ss:$8 sps:$4 sm:$0xff] (!%p240_p2)  }
   0x6   : > { %243 = sbr.rel (%p240_p2) target bundleno = 918 (0x396), region = 48  ;;  %1368 = vmatprep.subr.bf16.mxu0 (!%p240_p2), %v2848_v0  ;;  %v2853_v3 = vld [vmem:[%s3915_s1 + $0x110] ss:$8 sps:$4 sm:$0xff] (!%p240_p2)   ;;  %v2854_v4 = vld [vmem:[%s3915_s1 + $0x124] ss:$8 sps:$4 sm:$0xff] (!%p240_p2)   ;;  %s2429_s13 = sshll.u32 (!%p240_p2), %s2424_s25, 4 }
   0x7   : > { %1369 = vmatpush1.bf16.msra.mxu0 (!%p240_p2), %v2850_v1  ;;  %v2856_v5 = vld [vmem:[%s3915_s1 + $0x120] ss:$8 sps:$4 sm:$0xff] (!%p240_p2)   ;;  %p273_p3 = scmp.lt.s32.totalorder (!%p240_p2), %s2429_s13, 31  ;;  %v2857_v6 = vld [vmem:[%s3915_s1 + $0x134] ss:$8 sps:$4 sm:$0xff] (!%p240_p2)   ;;  %vm1230_vm0 = vcmask (!%p240_p2), 130048  }
   0x8   : > { %1370 = vmatprep.subr.bf16.mxu0 (!%p240_p2), %v2851_v2  ;;  %v2859_v7 = vld [vmem:[%s3915_s1 + $0x130] ss:$8 sps:$4 sm:$0xff] (!%p240_p2)   ;;  %v2860_v8 = vld [vmem:[%s3915_s1 + $0x144] ss:$8 sps:$4 sm:$0xff] (!%p240_p2)   ;;  %v2862_v9 = vld [vmem:[%s3915_s1 + $0x140] ss:$8 sps:$4 sm:$0xff] (!%p240_p2)  }
   0x9   : > { %v2863_v10 = vld [vmem:[%s3915_s1 + $0x154] ss:$8 sps:$4 sm:$0xff] (!%p240_p2)   ;;  %v2865_v11 = vld [vmem:[%s3915_s1 + $0x150] ss:$8 sps:$4 sm:$0xff] (!%p240_p2)   ;;  %v2866_v12 = vld [vmem:[%s3915_s1 + $0x164] ss:$8 sps:$4 sm:$0xff] (!%p240_p2)  }
   0xa   : > { %v2868_v14 = vld [vmem:[%s3915_s1 + $0x160] ss:$8 sps:$4 sm:$0xff] (!%p240_p2)   ;;  %v2869_v15 = vld [vmem:[%s3915_s1 + $0x174] ss:$8 sps:$4 sm:$0xff] (!%p240_p2)   ;;  %v2871_v16 = vld [vmem:[%s3915_s1 + $0x170] ss:$8 sps:$4 sm:$0xff] (!%p240_p2)  }
   0xb   : > { %1371 = vmatpush1.bf16.msra.mxu0 (!%p240_p2), %v2853_v3  ;;  %v2872_v17 = vld [vmem:[%s3915_s1 + $0x184] ss:$8 sps:$4 sm:$0xff] (!%p240_p2)   ;;  %v2874_v18 = vld [vmem:[%s3915_s1 + $0x180] ss:$8 sps:$4 sm:$0xff] (!%p240_p2)   ;;  %v2875_v19 = vld [vmem:[%s3915_s1 + $0x194] ss:$8 sps:$4 sm:$0xff] (!%p240_p2)  }
   0xc   : > { %1372 = vmatprep.subr.bf16.mxu0 (!%p240_p2), %v2854_v4  ;;  %v2877_v20 = vld [vmem:[%s3915_s1 + $0x190] ss:$8 sps:$4 sm:$0xff] (!%p240_p2)   ;;  %v2878_v21 = vld [vmem:[%s3915_s1 + $0x1a4] ss:$8 sps:$4 sm:$0xff] (!%p240_p2)   ;;  %v2880_v22 = vld [vmem:[%s3915_s1 + $0x1a0] ss:$8 sps:$4 sm:$0xff] (!%p240_p2)  }
   0xd   : > { %s3923_s13 = smov (!%p273_p3, %s2429_s13), 31  ;;  %v2881_v23 = vld [vmem:[%s3915_s1 + $0x1b4] ss:$8 sps:$4 sm:$0xff]   ;;  %v2883_v24 = vld [vmem:[%s3915_s1 + $0x1b0] ss:$8 sps:$4 sm:$0xff]  }
   0xe   : > { %s2838_s25 = smul.u32 28, %s3923_s13  ;;  %v2884_v25 = vld [vmem:[%s3915_s1 + $0x1c4] ss:$8 sps:$4 sm:$0xff]   ;;  %v2886_v26 = vld [vmem:[%s3915_s1 + $0x1c0] ss:$8 sps:$4 sm:$0xff]   ;;  %s2432_s21 = sshll.u32 %s3923_s13, 3 }
   0xf   : > { %1373 = vmatpush1.bf16.msra.mxu0 %v2856_v5  ;;  %v2887_v27 = vld [vmem:[%s3915_s1 + $0x1d4] ss:$8 sps:$4 sm:$0xff]   ;;  %v2889_v28 = vld [vmem:[%s3915_s1 + $0x1d0] ss:$8 sps:$4 sm:$0xff]   ;;  %v2890_v29 = vld [vmem:[%s3915_s1 + $0x1e4] ss:$8 sps:$4 sm:$0xff]   ;;  %s3877_s27 = scalar_lea.vmem %s3921_s7, %s2432_s21 }
  0x10   : > { %1374 = vmatprep.subr.bf16.mxu0 %v2857_v6  ;;  %s3238_s9 = scalar_lea.vmem %s3914_s0, %s2838_s25  ;;  %v2965_v30 = vld [vmem:[%s3915_s1 + $0x4] ss:$8 sps:$4 sm:$0xff]   ;;  %v2970_v31 = vld [vmem:[%s3915_s1] ss:$8 sps:$4 sm:$0xff]   ;;  %v2893_v33 = vld [vmem:[%s3915_s1 + $0x1f4] ss:$8 sps:$4 sm:$0xff]  }
  0x11   : > { %v2898_v13 = vld [vmem:[%s3238_s9 + $0xc] ss:$28 sps:$4 sm:$0xff]   ;;  %1255 = vmatprep.subr.bf16.mxu1 %v2965_v30  ;;  %v2974_v34 = vld [vmem:[%s3915_s1 + $0x14] ss:$8 sps:$4 sm:$0xff]   ;;  %v2895_v35 = vld [vmem:[%s3915_s1 + $0x1f0] ss:$8 sps:$4 sm:$0xff]  }
  0x12   : > { %1400 = vmatprep.mubr.bf16.mxu0 %v2898_v13  ;;  %v2892_v32 = vld [vmem:[%s3915_s1 + $0x1e0] ss:$8 sps:$4 sm:$0xff]   ;;  %1256 = vmatpush1.bf16.msra.mxu1 %v2970_v31  ;;  %v2979_v36 = vld [vmem:[%s3915_s1 + $0x10] ss:$8 sps:$4 sm:$0xff]   ;;  %v2901_v37 = vld [vmem:[%s3915_s1 + $0x204] ss:$8 sps:$4 sm:$0xff]  }
  0x13   : > { %1375 = vmatpush1.bf16.msra.mxu0 %v2859_v7  ;;  %1257 = vmatprep.subr.bf16.mxu1 %v2974_v34  ;;  %v2980_v38 = vld [vmem:[%s3915_s1 + $0x24] ss:$8 sps:$4 sm:$0xff]   ;;  %v2982_v39 = vld [vmem:[%s3915_s1 + $0x20] ss:$8 sps:$4 sm:$0xff]   ;;  %v2985_v40 = vld [vmem:[%s3915_s1 + $0x34] ss:$8 sps:$4 sm:$0xff]  }
  0x14   : > { %1376 = vmatprep.subr.bf16.mxu0 %v2860_v8  ;;  %v2896_v41 = vld [vmem:[%s3238_s9 + $0x8] ss:$28 sps:$4 sm:$0xff]   ;;  %v2904_v43 = vld [vmem:[%s3915_s1 + $0x214] ss:$8 sps:$4 sm:$0xff]   ;;  %v2988_v45 = vld [vmem:[%s3915_s1 + $0x30] ss:$8 sps:$4 sm:$0xff]  }
  0x15   : > { %v2899_v42 = vld [vmem:[%s3915_s1 + $0x200] ss:$8 sps:$4 sm:$0xff]   ;;  %v2989_v46 = vld [vmem:[%s3915_s1 + $0x44] ss:$8 sps:$4 sm:$0xff]   ;;  %v2902_v47 = vld [vmem:[%s3915_s1 + $0x210] ss:$8 sps:$4 sm:$0xff]  }
  0x16   : > { %1258 = vmatpush1.bf16.msra.mxu1 %v2979_v36  ;;  %v2905_v44 = vld [vmem:[%s3238_s9 + $0x44] ss:$28 sps:$4 sm:$0xff]   ;;  %v2994_v50 = vld [vmem:[%s3915_s1 + $0x54] ss:$8 sps:$4 sm:$0xff]   ;;  %v2997_v55 = vld [vmem:[%s3915_s1 + $0x50] ss:$8 sps:$4 sm:$0xff]  }
  0x17   : > { %1377 = vmatpush1.bf16.msra.mxu0 %v2862_v9  ;;  %1259 = vmatprep.subr.bf16.mxu1 %v2980_v38  ;;  %v2910_v48 = vld [vmem:[%s3915_s1 + $0x224] ss:$8 sps:$4 sm:$0xff]   ;;  %v2991_v49 = vld [vmem:[%s3915_s1 + $0x40] ss:$8 sps:$4 sm:$0xff]   ;;  %v2913_v53 = vld [vmem:[%s3915_s1 + $0x234] ss:$8 sps:$4 sm:$0xff]  }
  0x18   : > { %1378 = vmatprep.subr.bf16.mxu0 %v2863_v10  ;;  %v2907_v51 = vld [vmem:[%s3238_s9 + $0x40] ss:$28 sps:$4 sm:$0xff]   ;;  %v2998_v56 = vld [vmem:[%s3915_s1 + $0x64] ss:$8 sps:$4 sm:$0xff]   ;;  %v2911_v57 = vld [vmem:[%s3915_s1 + $0x230] ss:$8 sps:$4 sm:$0xff]  }
  0x19   : > { %v2908_v52 = vld [vmem:[%s3915_s1 + $0x220] ss:$8 sps:$4 sm:$0xff]   ;;  %v2914_v54 = vld [vmem:[%s3238_s9 + $0x7c] ss:$28 sps:$4 sm:$0xff]   ;;  %v2919_v58 = vld [vmem:[%s3915_s1 + $0x244] ss:$8 sps:$4 sm:$0xff]  }
  0x1a   : > { %1260 = vmatpush1.bf16.msra.mxu1 %v2982_v39  ;;  %v3000_v59 = vld [vmem:[%s3915_s1 + $0x60] ss:$8 sps:$4 sm:$0xff]   ;;  %v3003_v60 = vld [vmem:[%s3915_s1 + $0x74] ss:$8 sps:$4 sm:$0xff]   ;;  %v3006_v1 = vld [vmem:[%s3915_s1 + $0x70] ss:$8 sps:$4 sm:$0xff]  }
  0x1b   : > { %1379 = vmatpush1.bf16.msra.mxu0 %v2865_v11  ;;  %1261 = vmatprep.subr.bf16.mxu1 %v2985_v40  ;;  %v2916_v61 = vld [vmem:[%s3238_s9 + $0x78] ss:$28 sps:$4 sm:$0xff]   ;;  %v2917_v62 = vld [vmem:[%s3915_s1 + $0x240] ss:$8 sps:$4 sm:$0xff]   ;;  %v3007_v2 = vld [vmem:[%s3915_s1 + $0x84] ss:$8 sps:$4 sm:$0xff]  }
  0x1c   : > { %1380 = vmatprep.subr.bf16.mxu0 %v2866_v12  ;;  %v2922_v63 = vld [vmem:[%s3915_s1 + $0x254] ss:$8 sps:$4 sm:$0xff]   ;;  %v2920_v3 = vld [vmem:[%s3915_s1 + $0x250] ss:$8 sps:$4 sm:$0xff]   ;;  %v2928_v4 = vld [vmem:[%s3915_s1 + $0x264] ss:$8 sps:$4 sm:$0xff]  }
  0x1d   : > { %v2923_v0 = vld [vmem:[%s3238_s9 + $0xb4] ss:$28 sps:$4 sm:$0xff]   ;;  %v3009_v6 = vld [vmem:[%s3915_s1 + $0x80] ss:$8 sps:$4 sm:$0xff]   ;;  %v3016_v13 = vld [vmem:[%s3915_s1 + $0xa4] ss:$8 sps:$4 sm:$0xff]  }
  0x1e   : > { %1262 = vmatpush1.bf16.msra.mxu1 %v2988_v45  ;;  %v2925_v5 = vld [vmem:[%s3238_s9 + $0xb0] ss:$28 sps:$4 sm:$0xff]   ;;  %v3012_v7 = vld [vmem:[%s3915_s1 + $0x94] ss:$8 sps:$4 sm:$0xff]   ;;  %v2926_v8 = vld [vmem:[%s3915_s1 + $0x260] ss:$8 sps:$4 sm:$0xff]  }
  0x1f   : > { %1381 = vmatpush1.bf16.msra.mxu0 %v2868_v14  ;;  %1263 = vmatprep.subr.bf16.mxu1 %v2989_v46  ;;  %v2931_v9 = vld [vmem:[%s3915_s1 + $0x274] ss:$8 sps:$4 sm:$0xff]   ;;  %v2932_v10 = vld [vmem:[%s3238_s9 + $0xec] ss:$28 sps:$4 sm:$0xff]   ;;  %v3045_v11 = vld [vmem:[%s3238_s9 + $0x4] ss:$28 sps:$4 sm:$0xff]  }
  0x20   : > { %1382 = vmatprep.subr.bf16.mxu0 %v2869_v15  ;;  %v3015_v12 = vld [vmem:[%s3915_s1 + $0x90] ss:$8 sps:$4 sm:$0xff]   ;;  %1287 = vmatprep.mubr.bf16.mxu1 %v3045_v11  ;;  %v2934_v15 = vld [vmem:[%s3238_s9 + $0xe8] ss:$28 sps:$4 sm:$0xff]   ;;  %v2949_v31 = vld [vmem:[%s3915_s1 + $0x2b4] ss:$8 sps:$4 sm:$0xff]  }
  0x21   : > { %v2929_v14 = vld [vmem:[%s3915_s1 + $0x270] ss:$8 sps:$4 sm:$0xff]   ;;  %v3036_v36 = vld [vmem:[%s3915_s1 + $0xe0] ss:$8 sps:$4 sm:$0xff]  }
  0x22   : > { %1264 = vmatpush1.bf16.msra.mxu1 %v2991_v49  ;;  %v2950_v30 = vld [vmem:[%s3238_s9 + $0x15c] ss:$28 sps:$4 sm:$0xff]   ;;  %v2953_v39 = vld [vmem:[%s3915_s1 + $0x2c0] ss:$8 sps:$4 sm:$0xff]   ;;  %v2959_v40 = vld [vmem:[%s3238_s9 + $0x194] ss:$28 sps:$4 sm:$0xff]  }
  0x23   : > { %1383 = vmatpush1.bf16.msra.mxu0 %v2871_v16  ;;  %1265 = vmatprep.subr.bf16.mxu1 %v2994_v50  ;;  %v2937_v16 = vld [vmem:[%s3915_s1 + $0x284] ss:$8 sps:$4 sm:$0xff]   ;;  %v2947_v34 = vld [vmem:[%s3915_s1 + $0x2b0] ss:$8 sps:$4 sm:$0xff]   ;;  %v3043_v45 = vld [vmem:[%s3238_s9] ss:$28 sps:$4 sm:$0xff]  }
  0x24   : > { %1384 = vmatprep.subr.bf16.mxu0 %v2872_v17  ;;  %v3018_v17 = vld [vmem:[%s3915_s1 + $0xa0] ss:$8 sps:$4 sm:$0xff]   ;;  %v2952_v38 = vld [vmem:[%s3238_s9 + $0x158] ss:$28 sps:$4 sm:$0xff]  }
  0x25   : > { %v3047_v46 = vld [vmem:[%s3238_s9 + $0x3c] ss:$28 sps:$4 sm:$0xff]   ;;  %v2973_v49 = vld [vmem:[%s3238_s9 + $0x14] ss:$28 sps:$4 sm:$0xff]  }
  0x26   : > { %1266 = vmatpush1.bf16.msra.mxu1 %v2997_v55  ;;  %v2969_v50 = vld [vmem:[%s3915_s1 + $0x2f4] ss:$8 sps:$4 sm:$0xff]   ;;  %v3090_v11 = vld [vmem:[%s3917_s3 + $0x50] ss:$8 sps:$4 sm:$0xff]  }
  0x27   : > { %1385 = vmatpush1.bf16.msra.mxu0 %v2874_v18  ;;  %1267 = vmatprep.subr.bf16.mxu1 %v2998_v56  ;;  %v3021_v18 = vld [vmem:[%s3915_s1 + $0xb4] ss:$8 sps:$4 sm:$0xff]   ;;  %v2978_v56 = vld [vmem:[%s3915_s1 + $0x304] ss:$8 sps:$4 sm:$0xff]  }
  0x28   : > { %1386 = vmatprep.subr.bf16.mxu0 %v2875_v19  ;;  %v2935_v19 = vld [vmem:[%s3915_s1 + $0x280] ss:$8 sps:$4 sm:$0xff]   ;;  %v3080_v55 = vld [vmem:[%s3917_s3 + $0x14] ss:$8 sps:$4 sm:$0xff]  }
  0x2a   : > { %1268 = vmatpush1.bf16.msra.mxu1 %v3000_v59  ;;  %v2971_v59 = vld [vmem:[%s3238_s9 + $0x10] ss:$28 sps:$4 sm:$0xff]  }
  0x2b   : > { %1387 = vmatpush1.bf16.msra.mxu0 %v2877_v20  ;;  %1269 = vmatprep.subr.bf16.mxu1 %v3003_v60  ;;  %v2940_v20 = vld [vmem:[%s3915_s1 + $0x294] ss:$8 sps:$4 sm:$0xff]   ;;  %v3083_v60 = vld [vmem:[%s3917_s3 + $0x24] ss:$8 sps:$4 sm:$0xff]  }
  0x2c   : > { %1388 = vmatprep.subr.bf16.mxu0 %v2878_v21  ;;  %v2941_v21 = vld [vmem:[%s3238_s9 + $0x124] ss:$28 sps:$4 sm:$0xff]  }
  0x2e   : > { %1270 = vmatpush1.bf16.msra.mxu1 %v3006_v1  ;;  %v3055_v1 = vld [vmem:[%s3238_s9 + $0xac] ss:$28 sps:$4 sm:$0xff]  }
  0x2f   : > { %1389 = vmatpush1.bf16.msra.mxu0 %v2880_v22  ;;  %1271 = vmatprep.subr.bf16.mxu1 %v3007_v2  ;;  %v3024_v22 = vld [vmem:[%s3915_s1 + $0xb0] ss:$8 sps:$4 sm:$0xff]   ;;  %v3086_v2 = vld [vmem:[%s3917_s3 + $0x34] ss:$8 sps:$4 sm:$0xff]  }
  0x30   : > { %1390 = vmatprep.subr.bf16.mxu0 %v2881_v23  ;;  %v3025_v23 = vld [vmem:[%s3915_s1 + $0xc4] ss:$8 sps:$4 sm:$0xff]  }
  0x32   : > { %1272 = vmatpush1.bf16.msra.mxu1 %v3009_v6  ;;  %v3089_v6 = vld [vmem:[%s3917_s3 + $0x44] ss:$8 sps:$4 sm:$0xff]  }
  0x33   : > { %1391 = vmatpush1.bf16.msra.mxu0 %v2883_v24  ;;  %1273 = vmatprep.subr.bf16.mxu1 %v3012_v7  ;;  %v2938_v24 = vld [vmem:[%s3915_s1 + $0x290] ss:$8 sps:$4 sm:$0xff]   ;;  %v3087_v7 = vld [vmem:[%s3917_s3 + $0x40] ss:$8 sps:$4 sm:$0xff]  }
  0x34   : > { %1392 = vmatprep.subr.bf16.mxu0 %v2884_v25  ;;  %v2946_v25 = vld [vmem:[%s3915_s1 + $0x2a4] ss:$8 sps:$4 sm:$0xff]  }
  0x36   : > { %1274 = vmatpush1.bf16.msra.mxu1 %v3015_v12  ;;  %v2996_v12 = vld [vmem:[%s3238_s9 + $0x80] ss:$28 sps:$4 sm:$0xff]  }
  0x37   : > { %1393 = vmatpush1.bf16.msra.mxu0 %v2886_v26  ;;  %1275 = vmatprep.subr.bf16.mxu1 %v3016_v13  ;;  %v3027_v26 = vld [vmem:[%s3915_s1 + $0xc0] ss:$8 sps:$4 sm:$0xff]   ;;  %v3095_v13 = vld [vmem:[%s3917_s3 + $0x64] ss:$8 sps:$4 sm:$0xff]  }
  0x38   : > { %1394 = vmatprep.subr.bf16.mxu0 %v2887_v27  ;;  %v2943_v27 = vld [vmem:[%s3238_s9 + $0x120] ss:$28 sps:$4 sm:$0xff]  }
  0x3a   : > { %1276 = vmatpush1.bf16.msra.mxu1 %v3018_v17  ;;  %v3061_v17 = vld [vmem:[%s3238_s9 + $0xe0] ss:$28 sps:$4 sm:$0xff]  }
  0x3b   : > { %1395 = vmatpush1.bf16.msra.mxu0 %v2889_v28  ;;  %1277 = vmatprep.subr.bf16.mxu1 %v3021_v18  ;;  %v3030_v28 = vld [vmem:[%s3915_s1 + $0xd4] ss:$8 sps:$4 sm:$0xff]  }
  0x3c   : > { %1396 = vmatprep.subr.bf16.mxu0 %v2890_v29  ;;  %v2944_v29 = vld [vmem:[%s3915_s1 + $0x2a0] ss:$8 sps:$4 sm:$0xff]   ;;  %v3063_v18 = vld [vmem:[%s3238_s9 + $0x11c] ss:$28 sps:$4 sm:$0xff]  }
  0x3e   : > { %1278 = vmatpush1.bf16.msra.mxu1 %v3024_v22  ;;  %v3010_v22 = vld [vmem:[%s3238_s9 + $0xf4] ss:$28 sps:$4 sm:$0xff]  }
  0x3f   : > { %1397 = vmatpush1.bf16.msra.mxu0 %v2892_v32  ;;  %1279 = vmatprep.subr.bf16.mxu1 %v3025_v23  ;;  %v3033_v32 = vld [vmem:[%s3915_s1 + $0xd0] ss:$8 sps:$4 sm:$0xff]   ;;  %v3099_v23 = vld [vmem:[%s3917_s3 + $0x80] ss:$8 sps:$4 sm:$0xff]  }
  0x40   : > { %1398 = vmatprep.subr.bf16.mxu0 %v2893_v33  ;;  %v3034_v33 = vld [vmem:[%s3915_s1 + $0xe4] ss:$8 sps:$4 sm:$0xff]  }
  0x42   : > { %1280 = vmatpush1.bf16.msra.mxu1 %v3027_v26  ;;  %v3067_v26 = vld [vmem:[%s3238_s9 + $0x154] ss:$28 sps:$4 sm:$0xff]  }
  0x43   : > { %1399 = vmatpush1.bf16.msra.mxu0 %v2895_v35  ;;  %1281 = vmatprep.subr.bf16.mxu1 %v3030_v28  ;;  %v2955_v35 = vld [vmem:[%s3915_s1 + $0x2c4] ss:$8 sps:$4 sm:$0xff]  }
  0x44   : > { %1481 = vmatprep.subr.bf16.mxu0 %v2901_v37  ;;  %v3039_v37 = vld [vmem:[%s3915_s1 + $0xf4] ss:$8 sps:$4 sm:$0xff]   ;;  %v3014_v28 = vld [vmem:[%s3238_s9 + $0xf0] ss:$28 sps:$4 sm:$0xff]  }
  0x46   : > { %1401 = vmatmul.mubr.bf16.vlgmr.msra.gmra.mrb[0].mxu0 %v2896_v41  ;;  %1282 = vmatpush1.bf16.msra.mxu1 %v3033_v32  ;;  %v2958_v41 = vld [vmem:[%s3915_s1 + $0x2d4] ss:$8 sps:$4 sm:$0xff]  }
  0x47   : > { %1482 = vmatpush1.bf16.msra.mxu0 %v2899_v42  ;;  %1410 = vmatprep.mubr.bf16.mxu0 %v2905_v44  ;;  %v3042_v42 = vld [vmem:[%s3915_s1 + $0xf0] ss:$8 sps:$4 sm:$0xff]   ;;  %v2964_v44 = vld [vmem:[%s3915_s1 + $0x2e4] ss:$8 sps:$4 sm:$0xff]   ;;  %v3110_v32 = vld [vmem:[%s3917_s3 + $0xb4] ss:$8 sps:$4 sm:$0xff]  }
  0x48   : > { %1483 = vmatprep.subr.bf16.mxu0 %v2904_v43  ;;  %1283 = vmatprep.subr.bf16.mxu1 %v3034_v33  ;;  %v2956_v43 = vld [vmem:[%s3915_s1 + $0x2d0] ss:$8 sps:$4 sm:$0xff]  }
  0x49   : > { %v3069_v33 = vld [vmem:[%s3238_s9 + $0x150] ss:$28 sps:$4 sm:$0xff]  }
  0x4a   : > { %1284 = vmatpush1.bf16.msra.mxu1 %v3036_v36  ;;  %v3023_v36 = vld [vmem:[%s3238_s9 + $0x128] ss:$28 sps:$4 sm:$0xff]  }
  0x4b   : > { %1484 = vmatpush1.bf16.msra.mxu0 %v2902_v47  ;;  %1285 = vmatprep.subr.bf16.mxu1 %v3039_v37  ;;  %v2961_v47 = vld [vmem:[%s3238_s9 + $0x190] ss:$28 sps:$4 sm:$0xff]  }
  0x4c   : > { %1485 = vmatprep.subr.bf16.mxu0 %v2910_v48  ;;  %v2962_v48 = vld [vmem:[%s3915_s1 + $0x2e0] ss:$8 sps:$4 sm:$0xff]   ;;  %v3113_v37 = vld [vmem:[%s3917_s3 + $0xc4] ss:$8 sps:$4 sm:$0xff]  }
  0x4e   : > { %1411 = vmatmul.mubr.bf16.gmra.mrb[4].mxu0 %v2907_v51  ;;  %1286 = vmatpush1.bf16.msra.mxu1 %v3042_v42  ;;  %v3075_v51 = vld [vmem:[%s3917_s3] ss:$8 sps:$4 sm:$0xff]   ;;  %v3037_v42 = vld [vmem:[%s3238_s9 + $0x19c] ss:$28 sps:$4 sm:$0xff]  }
  0x4f   : > { %1486 = vmatpush1.bf16.msra.mxu0 %v2908_v52  ;;  %1420 = vmatprep.mubr.bf16.mxu0 %v2914_v54  ;;  %v3077_v52 = vld [vmem:[%s3917_s3 + $0x4] ss:$8 sps:$4 sm:$0xff]   ;;  %v3049_v54 = vld [vmem:[%s3238_s9 + $0x38] ss:$28 sps:$4 sm:$0xff]  }
  0x50   : > { %1487 = vmatprep.subr.bf16.mxu0 %v2913_v53  ;;  %v2967_v53 = vld [vmem:[%s3915_s1 + $0x2f0] ss:$8 sps:$4 sm:$0xff]   ;;  %1959 = vmatprep.subr.bf16.mxu1 %v3077_v52 }
  0x51   : > { %1288 = vmatmul.mubr.bf16.vlgmr.msra.gmra.mrb[0].mxu1 %v3043_v45  ;;  %v3046_v45 = vld [vmem:[%s3238_s9 + $0x18] ss:$28 sps:$4 sm:$0xff]   ;;  %v3066_v52 = vld [vmem:[%s3238_s9 + $0x130] ss:$28 sps:$4 sm:$0xff]  }
  0x52   : > { %1297 = vmatprep.mubr.bf16.mxu1 %v3047_v46  ;;  %1960 = vmatpush1.bf16.msra.mxu1 %v3075_v51  ;;  %v3050_v46 = vld [vmem:[%s3238_s9 + $0x50] ss:$28 sps:$4 sm:$0xff]   ;;  %v3062_v51 = vld [vmem:[%s3238_s9 + $0xf8] ss:$28 sps:$4 sm:$0xff]  }
  0x53   : > { %1488 = vmatpush1.bf16.msra.mxu0 %v2911_v57  ;;  %v3051_v57 = vld [vmem:[%s3238_s9 + $0x74] ss:$28 sps:$4 sm:$0xff]   ;;  %1961 = vmatprep.subr.bf16.mxu1 %v3080_v55  ;;  %v3119_v55 = vld [vmem:[%s3917_s3 + $0xe4] ss:$8 sps:$4 sm:$0xff]  }
  0x54   : > { %1489 = vmatprep.subr.bf16.mxu0 %v2919_v58  ;;  %v3078_v58 = vld [vmem:[%s3917_s3 + $0x10] ss:$8 sps:$4 sm:$0xff]  }
  0x56   : > { %1421 = vmatmul.mubr.bf16.gmra.mrb[8].mxu0 %v2916_v61  ;;  %v2976_v61 = vld [vmem:[%s3915_s1 + $0x300] ss:$8 sps:$4 sm:$0xff]   ;;  %1962 = vmatpush1.bf16.msra.mxu1 %v3078_v58  ;;  %v3120_v58 = vld [vmem:[%s3917_s3 + $0xf0] ss:$8 sps:$4 sm:$0xff]  }
  0x57   : > { %1490 = vmatpush1.bf16.msra.mxu0 %v2917_v62  ;;  %1430 = vmatprep.mubr.bf16.mxu0 %v2923_v0  ;;  %v2983_v62 = vld [vmem:[%s3238_s9 + $0x4c] ss:$28 sps:$4 sm:$0xff]  }
  0x58   : > { %1491 = vmatprep.subr.bf16.mxu0 %v2922_v63  ;;  %v3081_v63 = vld [vmem:[%s3917_s3 + $0x20] ss:$8 sps:$4 sm:$0xff]   ;;  %v3053_v0 = vld [vmem:[%s3238_s9 + $0x70] ss:$28 sps:$4 sm:$0xff]   ;;  %1963 = vmatprep.subr.bf16.mxu1 %v3083_v60 }
  0x59   : > { %1298 = vmatmul.mubr.bf16.gmra.mrb[4].mxu1 %v3049_v54  ;;  %v3074_v54 = vld [vmem:[%s3238_s9 + $0x1a0] ss:$28 sps:$4 sm:$0xff]  }
  0x5a   : > { %1307 = vmatprep.mubr.bf16.mxu1 %v3051_v57  ;;  %1964 = vmatpush1.bf16.msra.mxu1 %v3081_v63  ;;  %v3122_v57 = vld [vmem:[%s3917_s3 + $0xf4] ss:$8 sps:$4 sm:$0xff]  }
  0x5b   : > { %1492 = vmatpush1.bf16.msra.mxu0 %v2920_v3  ;;  %v3084_v3 = vld [vmem:[%s3917_s3 + $0x30] ss:$8 sps:$4 sm:$0xff]   ;;  %1965 = vmatprep.subr.bf16.mxu1 %v3086_v2 }
  0x5c   : > { %1493 = vmatprep.subr.bf16.mxu0 %v2928_v4  ;;  %v2987_v4 = vld [vmem:[%s3238_s9 + $0x48] ss:$28 sps:$4 sm:$0xff]  }
  0x5e   : > { %1431 = vmatmul.mubr.bf16.gmra.mrb[12].mxu0 %v2925_v5  ;;  %v2992_v5 = vld [vmem:[%s3238_s9 + $0x84] ss:$28 sps:$4 sm:$0xff]   ;;  %1966 = vmatpush1.bf16.msra.mxu1 %v3084_v3 }
  0x5f   : > { %1494 = vmatpush1.bf16.msra.mxu0 %v2926_v8  ;;  %1440 = vmatprep.mubr.bf16.mxu0 %v2932_v10  ;;  %v3092_v8 = vld [vmem:[%s3917_s3 + $0x54] ss:$8 sps:$4 sm:$0xff]   ;;  %v3059_v10 = vld [vmem:[%s3238_s9 + $0xe4] ss:$28 sps:$4 sm:$0xff]  }
  0x60   : > { %1495 = vmatprep.subr.bf16.mxu0 %v2931_v9  ;;  %1967 = vmatprep.subr.bf16.mxu1 %v3089_v6  ;;  %v3057_v9 = vld [vmem:[%s3238_s9 + $0xa8] ss:$28 sps:$4 sm:$0xff]  }
  0x61   : > { %1308 = vmatmul.mubr.bf16.gmra.mrb[8].mxu1 %v3053_v0  ;;  %v3123_v3 = vld [vmem:[%s3919_s5 + $0x40] sm:$0xff]  }
  0x62   : > { %1317 = vmatprep.mubr.bf16.mxu1 %v3055_v1  ;;  %1968 = vmatpush1.bf16.msra.mxu1 %v3087_v7 }
  0x63   : > { %1496 = vmatpush1.bf16.msra.mxu0 %v2929_v14  ;;  %1969 = vmatprep.subr.bf16.mxu1 %v3092_v8  ;;  %v3001_v14 = vld [vmem:[%s3238_s9 + $0xbc] ss:$28 sps:$4 sm:$0xff]  }
  0x64   : > { %1497 = vmatprep.subr.bf16.mxu0 %v2937_v16  ;;  %v3098_v16 = vld [vmem:[%s3917_s3 + $0x74] ss:$8 sps:$4 sm:$0xff]  }
  0x66   : > { %1441 = vmatmul.mubr.bf16.gmra.mrb[16].mxu0 %v2934_v15  ;;  %1970 = vmatpush1.bf16.msra.mxu1 %v3090_v11  ;;  %v3093_v15 = vld [vmem:[%s3917_s3 + $0x60] ss:$8 sps:$4 sm:$0xff]  }
  0x67   : > { %1498 = vmatpush1.bf16.msra.mxu0 %v2935_v19  ;;  %1450 = vmatprep.mubr.bf16.mxu0 %v2941_v21  ;;  %v3096_v19 = vld [vmem:[%s3917_s3 + $0x70] ss:$8 sps:$4 sm:$0xff]   ;;  %v3101_v21 = vld [vmem:[%s3917_s3 + $0x84] ss:$8 sps:$4 sm:$0xff]  }
  0x68   : > { %1499 = vmatprep.subr.bf16.mxu0 %v2940_v20  ;;  %1971 = vmatprep.subr.bf16.mxu1 %v3095_v13  ;;  %v3005_v20 = vld [vmem:[%s3238_s9 + $0xb8] ss:$28 sps:$4 sm:$0xff]  }
  0x69   : > { %1318 = vmatmul.mubr.bf16.gmra.mrb[12].mxu1 %v3057_v9 }
  0x6a   : > { %1327 = vmatprep.mubr.bf16.mxu1 %v3059_v10  ;;  %1972 = vmatpush1.bf16.msra.mxu1 %v3093_v15 }
  0x6b   : > { %1500 = vmatpush1.bf16.msra.mxu0 %v2938_v24  ;;  %1973 = vmatprep.subr.bf16.mxu1 %v3098_v16  ;;  %v3104_v24 = vld [vmem:[%s3917_s3 + $0x94] ss:$8 sps:$4 sm:$0xff]  }
  0x6c   : > { %1501 = vmatprep.subr.bf16.mxu0 %v2946_v25  ;;  %v3065_v25 = vld [vmem:[%s3238_s9 + $0x118] ss:$28 sps:$4 sm:$0xff]  }
  0x6e   : > { %1451 = vmatmul.mubr.bf16.gmra.mrb[20].mxu0 %v2943_v27  ;;  %1974 = vmatpush1.bf16.msra.mxu1 %v3096_v19  ;;  %v3102_v27 = vld [vmem:[%s3917_s3 + $0x90] ss:$8 sps:$4 sm:$0xff]  }
  0x6f   : > { %1502 = vmatpush1.bf16.msra.mxu0 %v2944_v29  ;;  %1460 = vmatprep.mubr.bf16.mxu0 %v2950_v30  ;;  %v3107_v29 = vld [vmem:[%s3917_s3 + $0xa4] ss:$8 sps:$4 sm:$0xff]  }
  0x70   : > { %1503 = vmatprep.subr.bf16.mxu0 %v2949_v31  ;;  %1975 = vmatprep.subr.bf16.mxu1 %v3101_v21  ;;  %v3019_v30 = vld [vmem:[%s3238_s9 + $0x12c] ss:$28 sps:$4 sm:$0xff]  }
  0x71   : > { %1328 = vmatmul.mubr.bf16.gmra.mrb[16].mxu1 %v3061_v17  ;;  %v3105_v31 = vld [vmem:[%s3917_s3 + $0xa0] ss:$8 sps:$4 sm:$0xff]  }
  0x72   : > { %1337 = vmatprep.mubr.bf16.mxu1 %v3063_v18  ;;  %1976 = vmatpush1.bf16.msra.mxu1 %v3099_v23 }
  0x73   : > { %1504 = vmatpush1.bf16.msra.mxu0 %v2947_v34  ;;  %1977 = vmatprep.subr.bf16.mxu1 %v3104_v24  ;;  %v3071_v34 = vld [vmem:[%s3238_s9 + $0x18c] ss:$28 sps:$4 sm:$0xff]   ;;  %v450_v24 = vlaneseq }
  0x74   : > { %1505 = vmatprep.subr.bf16.mxu0 %v2955_v35  ;;  %v3108_v35 = vld [vmem:[%s3917_s3 + $0xb0] ss:$8 sps:$4 sm:$0xff]  }
  0x76   : > { %1461 = vmatmul.mubr.bf16.gmra.mrb[24].mxu0 %v2952_v38  ;;  %1978 = vmatpush1.bf16.msra.mxu1 %v3102_v27  ;;  %v3028_v38 = vld [vmem:[%s3238_s9 + $0x164] ss:$28 sps:$4 sm:$0xff]  }
  0x77   : > { %1506 = vmatpush1.bf16.msra.mxu0 %v2953_v39  ;;  %1470 = vmatprep.mubr.bf16.mxu0 %v2959_v40  ;;  %v3111_v39 = vld [vmem:[%s3917_s3 + $0xc0] ss:$8 sps:$4 sm:$0xff]  }
  0x78   : > { %1507 = vmatprep.subr.bf16.mxu0 %v2958_v41  ;;  %1979 = vmatprep.subr.bf16.mxu1 %v3107_v29  ;;  %v3073_v40 = vld [vmem:[%s3238_s9 + $0x188] ss:$28 sps:$4 sm:$0xff]   ;;  %v3032_v41 = vld [vmem:[%s3238_s9 + $0x160] ss:$28 sps:$4 sm:$0xff]   ;;  %v3709_v29 = vshrl.u32 %v450_v24, 7 }
  0x79   : > { %1338 = vmatmul.mubr.bf16.gmra.mrb[20].mxu1 %v3065_v25 }
  0x7a   : > { %1347 = vmatprep.mubr.bf16.mxu1 %v3067_v26  ;;  %1980 = vmatpush1.bf16.msra.mxu1 %v3105_v31  ;;  %v448_v31 = vld [vmem:[%s3916_s2] sm:$0x3] }
  0x7b   : > { %1508 = vmatpush1.bf16.msra.mxu0 %v2956_v43  ;;  %1981 = vmatprep.subr.bf16.mxu1 %v3110_v32  ;;  %v3041_v43 = vld [vmem:[%s3238_s9 + $0x198] ss:$28 sps:$4 sm:$0xff]   ;;  %v456_v32 = vsub.s32 1, %v3709_v29 }
  0x7c   : > { %1509 = vmatprep.subr.bf16.mxu0 %v2964_v44  ;;  %v3147_v44 = vmov 0  }
  0x7e   : > { %1471 = vmatmul.mubr.bf16.gmra.mrb[28].mxu0 %v2961_v47  ;;  %1982 = vmatpush1.bf16.msra.mxu1 %v3108_v35  ;;  %v3054_v47 = vld [vmem:[%s3238_s9 + $0x88] ss:$28 sps:$4 sm:$0xff]  }
  0x7f   : > { %1510 = vmatpush1.bf16.msra.mxu0 %v2962_v48  ;;  %1513 = vmatprep.mubr.bf16.mxu0 %v2973_v49  ;;  %v3114_v48 = vld [vmem:[%s3917_s3 + $0xd0] ss:$8 sps:$4 sm:$0xff]   ;;  %v3116_v49 = vld [vmem:[%s3917_s3 + $0xd4] ss:$8 sps:$4 sm:$0xff]  }
  0x80   : > { %1511 = vmatprep.subr.bf16.mxu0 %v2969_v50  ;;  %1983 = vmatprep.subr.bf16.mxu1 %v3113_v37  ;;  %v3058_v50 = vld [vmem:[%s3238_s9 + $0xc0] ss:$28 sps:$4 sm:$0xff]  }
  0x81   : > { %1348 = vmatmul.mubr.bf16.gmra.mrb[24].mxu1 %v3069_v33 }
  0x82   : > { %1357 = vmatprep.mubr.bf16.mxu1 %v3071_v34  ;;  %1984 = vmatpush1.bf16.msra.mxu1 %v3111_v39  ;;  %v3722_v34 = vrot.slane %v448_v31, %v456_v32 }
  0x83   : > { %1512 = vmatpush1.bf16.msra.mxu0 %v2967_v53  ;;  %1985 = vmatprep.subr.bf16.mxu1 %v3116_v49  ;;  %v3070_v53 = vld [vmem:[%s3238_s9 + $0x168] ss:$28 sps:$4 sm:$0xff]  }
  0x84   : > { %1594 = vmatprep.subr.bf16.mxu0 %v2978_v56  ;;  %v3117_v56 = vld [vmem:[%s3917_s3 + $0xe0] ss:$8 sps:$4 sm:$0xff]  }
  0x86   : > { %1514 = vmatmul.mubr.bf16.vlgmr.msra.gmra.mrb[0].mxu0 %v2971_v59  ;;  %1986 = vmatpush1.bf16.msra.mxu1 %v3114_v48 }
  0x87   : > { %1595 = vmatpush1.bf16.msra.mxu0 %v2976_v61  ;;  %1523 = vmatprep.mubr.bf16.mxu0 %v2983_v62 }
  0x88   : > { %1987 = vmatprep.subr.bf16.mxu1 %v3119_v55 }
  0x89   : > { %1358 = vmatmul.mubr.bf16.gmra.mrb[28].mxu1 %v3073_v40 }
  0x8a   : > { %1988 = vmatpush1.bf16.msra.mxu1 %v3117_v56  ;;  %v3124_v56 = vld [vmem:[%s3919_s5] sm:$0xff]  }
  0x8b   : > { %1989 = vmatprep.subr.bf16.mxu1 %v3122_v57 }
  0x8e   : > { %1524 = vmatmul.mubr.bf16.gmra.mrb[4].mxu0 %v2987_v4  ;;  %1990 = vmatpush1.bf16.msra.mxu1 %v3120_v58 }
  0x8f   : > { %1533 = vmatprep.mubr.bf16.mxu0 %v2992_v5  ;;  %2646 = vmatprep.subr.bf16.mxu1 %v3123_v3 }
  0x96   : > { %1534 = vmatmul.mubr.bf16.gmra.mrb[8].mxu0 %v2996_v12 }
  0x97   : > { %1543 = vmatprep.mubr.bf16.mxu0 %v3001_v14 }
  0x9e   : > { %1544 = vmatmul.mubr.bf16.gmra.mrb[12].mxu0 %v3005_v20 }
  0x9f   : > { %1553 = vmatprep.mubr.bf16.mxu0 %v3010_v22 }
  0xa6   : > { %1554 = vmatmul.mubr.bf16.gmra.mrb[16].mxu0 %v3014_v28 }
  0xa7   : > { %1563 = vmatprep.mubr.bf16.mxu0 %v3019_v30  ;;  %v452_v30 = vsub.s32 0, %v3709_v29 }
  0xa9   : > { %v3718_v33 = vrot.slane %v448_v31, %v452_v30 }
  0xae   : > { %1564 = vmatmul.mubr.bf16.gmra.mrb[20].mxu0 %v3023_v36 }
  0xaf   : > { %1573 = vmatprep.mubr.bf16.mxu0 %v3028_v38 }
  0xb6   : > { %1574 = vmatmul.mubr.bf16.gmra.mrb[24].mxu0 %v3032_v41 }
  0xb7   : > { %1583 = vmatprep.mubr.bf16.mxu0 %v3037_v42 }
  0xbe   : > { %1584 = vmatmul.mubr.bf16.gmra.mrb[28].mxu0 %v3041_v43 }
  0xbf   : > { %1626 = vmatprep.mubr.bf16.mxu0 %v3147_v44 }
  0xc6   : > { %2587 = vmatmul.mubr.msk.bf16.vlgmr.msra.gmra.mrb[0].mxu0 %vm1230_vm0, %v3046_v45 }
  0xc7   : > { %1636 = vmatprep.mubr.bf16.mxu0 %v3147_v44 }
  0xce   : > { %2588 = vmatmul.mubr.msk.bf16.gmra.mrb[4].mxu0 %vm1230_vm0, %v3050_v46 }
  0xcf   : > { %1646 = vmatprep.mubr.bf16.mxu0 %v3147_v44 }
  0xd6   : > { %2589 = vmatmul.mubr.msk.bf16.gmra.mrb[8].mxu0 %vm1230_vm0, %v3054_v47 }
  0xd7   : > { %1656 = vmatprep.mubr.bf16.mxu0 %v3147_v44 }
  0xde   : > { %2590 = vmatmul.mubr.msk.bf16.gmra.mrb[12].mxu0 %vm1230_vm0, %v3058_v50 }
  0xdf   : > { %1666 = vmatprep.mubr.bf16.mxu0 %v3147_v44 }
  0xe6   : > { %2591 = vmatmul.mubr.msk.bf16.gmra.mrb[16].mxu0 %vm1230_vm0, %v3062_v51 }
  0xe7   : > { %1676 = vmatprep.mubr.bf16.mxu0 %v3147_v44 }
  0xee   : > { %2592 = vmatmul.mubr.msk.bf16.gmra.mrb[20].mxu0 %vm1230_vm0, %v3066_v52 }
  0xef   : > { %1686 = vmatprep.mubr.bf16.mxu0 %v3147_v44 }
  0xf6   : > { %2593 = vmatmul.mubr.msk.bf16.gmra.mrb[24].mxu0 %vm1230_vm0, %v3070_v53 }
  0xf7   : > { %1696 = vmatprep.mubr.bf16.mxu0 %v3147_v44 }
  0xfe   : > { %2594 = vmatmul.mubr.msk.bf16.gmra.mrb[28].mxu0 %vm1230_vm0, %v3074_v54 }
 0x124   : > { %v1289_v59 = vpop.f32.mrb[0].mxu1 }
 0x125   : > { %v1291_v60 = vpop.f32.mrb[1].mxu1  ;;  %v1290_v35 = vadd.f32 %v1289_v59, %v3718_v33 }
 0x126   : > { %v1293_v61 = vpop.f32.mrb[2].mxu1  ;;  %v1292_v36 = vadd.f32 %v1291_v60, %v3722_v34  ;;  %v3125_v60 = vld [vmem:[%s3919_s5 + $0x48] sm:$0xff]  }
 0x127   : > { %v1295_v62 = vpop.f32.mrb[3].mxu1  ;;  %v1294_v38 = vadd.f32 %v1293_v61, %v3718_v33 }
 0x128   : > { %v1296_v41 = vadd.f32 %v1295_v62, %v3722_v34 }
 0x12c   : > { %v1299_v63 = vpop.f32.mrb[4].mxu1 }
 0x12d   : > { %v1301_v0 = vpop.f32.mrb[5].mxu1  ;;  %v1300_v49 = vadd.f32 %v1299_v63, %v3718_v33 }
 0x12e   : > { %v1303_v1 = vpop.f32.mrb[6].mxu1  ;;  %v1302_v52 = vadd.f32 %v1301_v0, %v3722_v34 }
 0x12f   : > { %v1305_v2 = vpop.f32.mrb[7].mxu1  ;;  %v1304_v57 = vadd.f32 %v1303_v1, %v3718_v33  ;;  %v3126_v1 = vld [vmem:[%s3919_s5 + $0x8] sm:$0xff]  }
 0x130   : > { %v1306_v61 = vadd.f32 %v1305_v2, %v3722_v34  ;;  %v3127_v2 = vld [vmem:[%s3919_s5 + $0x50] sm:$0xff]  }
 0x134   : > { %v3661_v4 = vpop.f32.mrb[8].mxu1 }
 0x135   : > { %v3663_v5 = vpop.f32.mrb[9].mxu1 }
 0x136   : > { %v3665_v6 = vpop.f32.mrb[10].mxu1 }
 0x137   : > { %v3667_v7 = vpop.f32.mrb[11].mxu1 }
 0x13c   : > { %v3669_v8 = vpop.f32.mrb[12].mxu1 }
 0x13d   : > { %v3671_v9 = vpop.f32.mrb[13].mxu1 }
 0x13e   : > { %v3673_v10 = vpop.f32.mrb[14].mxu1 }
 0x13f   : > { %v3675_v11 = vpop.f32.mrb[15].mxu1 }
 0x144   : > { %v3677_v12 = vpop.f32.mrb[16].mxu1 }
 0x145   : > { %v3679_v13 = vpop.f32.mrb[17].mxu1 }
 0x146   : > { %v3681_v14 = vpop.f32.mrb[18].mxu1 }
 0x147   : > { %v3683_v15 = vpop.f32.mrb[19].mxu1 }
 0x14c   : > { %v3685_v16 = vpop.f32.mrb[20].mxu1 }
 0x14d   : > { %v3687_v17 = vpop.f32.mrb[21].mxu1 }
 0x14e   : > { %v3689_v18 = vpop.f32.mrb[22].mxu1 }
 0x14f   : > { %v3691_v19 = vpop.f32.mrb[23].mxu1 }
 0x154   : > { %v3693_v20 = vpop.f32.mrb[24].mxu1 }
 0x155   : > { %v3695_v21 = vpop.f32.mrb[25].mxu1 }
 0x156   : > { %v3697_v22 = vpop.f32.mrb[26].mxu1 }
 0x157   : > { %v3699_v23 = vpop.f32.mrb[27].mxu1 }
 0x15c   : > { %v3701_v25 = vpop.f32.mrb[28].mxu1 }
 0x15d   : > { %v3703_v26 = vpop.f32.mrb[29].mxu1 }
 0x15e   : > { %v3705_v27 = vpop.f32.mrb[30].mxu1 }
 0x15f   : > { %v3707_v28 = vpop.f32.mrb[31].mxu1 }
 0x199   : > { %v1628_v37 = vpop.f32.mrb[0].mxu0 }
 0x19a   : > { %v2711_v39 = vadd.f32 %v1628_v37, %v1290_v35  ;;  %v1630_v40 = vpop.f32.mrb[1].mxu0 }
 0x19b   : > { %v2713_v42 = vadd.f32 %v1630_v40, %v1292_v36  ;;  %v1632_v43 = vpop.f32.mrb[2].mxu0  ;;  %v1310_v36 = vadd.f32 %v3661_v4, %v3718_v33  ;;  %v1314_v4 = vadd.f32 %v3665_v6, %v3718_v33  ;;  %v3130_v6 = vld [vmem:[%s3919_s5 + $0x18] sm:$0xff]  }
 0x19c   : > { %v2715_v44 = vadd.f32 %v1632_v43, %v1294_v38  ;;  %v1634_v45 = vpop.f32.mrb[3].mxu0  ;;  %v1707_v47 = vmax.f32 %v2711_v39, 0.0  ;;  %v1312_v39 = vadd.f32 %v3663_v5, %v3722_v34  ;;  %v3128_v43 = vld [vmem:[%s3919_s5 + $0x10] sm:$0xff]   ;;  %v1316_v5 = vadd.f32 %v3667_v7, %v3722_v34  ;;  %v3131_v7 = vld [vmem:[%s3919_s5 + $0x60] sm:$0xff]  }
 0x19d   : > { %v2717_v46 = vadd.f32 %v1634_v45, %v1296_v41  ;;  %v1708_v50 = vmax.f32 %v2713_v42, 0.0 }
 0x19e   : > { %v1709_v48 = vmax.f32 %v2715_v44, 0.0 }
 0x19f   : > { %v1710_v51 = vmax.f32 %v2717_v46, 0.0  ;;  %v3129_v46 = vld [vmem:[%s3919_s5 + $0x58] sm:$0xff]  }
 0x1a0   : > { %v1739_v53 = vpack.c.bf16 %v1709_v48, %v1707_v47 }
 0x1a1   : > { %v1740_v54 = vpack.c.bf16 %v1710_v51, %v1708_v50  ;;  %v1638_v55 = vpop.f32.mrb[4].mxu0 }
 0x1a2   : > { %v2719_v58 = vadd.f32 %v1638_v55, %v1300_v49  ;;  %v1640_v59 = vpop.f32.mrb[5].mxu0 }
 0x1a3   : > { %v2721_v62 = vadd.f32 %v1640_v59, %v1302_v52  ;;  %v1642_v63 = vpop.f32.mrb[6].mxu0  ;;  %1991 = vmatprep.mubr.bf16.mxu1 %v1740_v54  ;;  %v1320_v54 = vadd.f32 %v3669_v8, %v3718_v33  ;;  %v1324_v8 = vadd.f32 %v3673_v10, %v3718_v33  ;;  %v3134_v10 = vld [vmem:[%s3919_s5 + $0x28] sm:$0xff]  }
 0x1a4   : > { %v2723_v0 = vadd.f32 %v1642_v63, %v1304_v57  ;;  %v1644_v3 = vpop.f32.mrb[7].mxu0  ;;  %1992 = vmatmul.mubr.bf16.vlgmr.msra.gmra.mrb[32].mxu1 %v1739_v53  ;;  %v1711_v31 = vmax.f32 %v2719_v58, 0.0  ;;  %v1322_v57 = vadd.f32 %v3671_v9, %v3722_v34  ;;  %v1326_v9 = vadd.f32 %v3675_v11, %v3722_v34  ;;  %v3135_v11 = vld [vmem:[%s3919_s5 + $0x70] sm:$0xff]  }
 0x1a5   : > { %v2725_v24 = vadd.f32 %v1644_v3, %v1306_v61  ;;  %2647 = vmatpush3.bf16.msra.mxu1 %v3124_v56  ;;  %v1712_v37 = vmax.f32 %v2721_v62, 0.0  ;;  %v3132_v61 = vld [vmem:[%s3919_s5 + $0x20] sm:$0xff]  }
 0x1a6   : > { %v1713_v35 = vmax.f32 %v2723_v0, 0.0  ;;  %2648 = vmatprep.subr.bf16.mxu1 %v3125_v60  ;;  %v3133_v0 = vld [vmem:[%s3919_s5 + $0x68] sm:$0xff]  }
 0x1a7   : > { %v1714_v38 = vmax.f32 %v2725_v24, 0.0 }
 0x1a8   : > { %v1741_v40 = vpack.c.bf16 %v1713_v35, %v1711_v31 }
 0x1a9   : > { %v1742_v41 = vpack.c.bf16 %v1714_v38, %v1712_v37  ;;  %v1648_v42 = vpop.f32.mrb[8].mxu0  ;;  %2649 = vmatpush3.bf16.msra.mxu1 %v3126_v1  ;;  %v1330_v37 = vadd.f32 %v3677_v12, %v3718_v33  ;;  %v1334_v12 = vadd.f32 %v3681_v14, %v3718_v33 }
 0x1aa   : > { %v2727_v44 = vadd.f32 %v1648_v42, %v1310_v36  ;;  %v1650_v45 = vpop.f32.mrb[9].mxu0  ;;  %2650 = vmatprep.subr.bf16.mxu1 %v3127_v2 }
 0x1ab   : > { %v2729_v47 = vadd.f32 %v1650_v45, %v1312_v39  ;;  %v1652_v48 = vpop.f32.mrb[10].mxu0  ;;  %2001 = vmatprep.mubr.bf16.mxu1 %v1742_v41 }
 0x1ac   : > { %v2731_v49 = vadd.f32 %v1652_v48, %v1314_v4  ;;  %v1654_v50 = vpop.f32.mrb[11].mxu0  ;;  %2002 = vmatmul.mubr.bf16.gmra.mrb[36].mxu1 %v1741_v40  ;;  %v1715_v52 = vmax.f32 %v2727_v44, 0.0  ;;  %v1332_v40 = vadd.f32 %v3679_v13, %v3722_v34  ;;  %v3136_v4 = vld [vmem:[%s3919_s5 + $0x30] sm:$0xff]  }
 0x1ad   : > { %v2733_v51 = vadd.f32 %v1654_v50, %v1316_v5  ;;  %2651 = vmatpush3.bf16.msra.mxu1 %v3128_v43  ;;  %v1716_v55 = vmax.f32 %v2729_v47, 0.0 }
 0x1ae   : > { %v1717_v53 = vmax.f32 %v2731_v49, 0.0  ;;  %2652 = vmatprep.subr.bf16.mxu1 %v3129_v46  ;;  %v1336_v46 = vadd.f32 %v3683_v15, %v3722_v34 }
 0x1af   : > { %v1718_v56 = vmax.f32 %v2733_v51, 0.0 }
 0x1b0   : > { %v1743_v58 = vpack.c.bf16 %v1717_v53, %v1715_v52  ;;  %v1342_v53 = vadd.f32 %v3687_v17, %v3722_v34 }
 0x1b1   : > { %v1744_v59 = vpack.c.bf16 %v1718_v56, %v1716_v55  ;;  %v1658_v60 = vpop.f32.mrb[12].mxu0  ;;  %2653 = vmatpush3.bf16.msra.mxu1 %v3130_v6  ;;  %v1340_v6 = vadd.f32 %v3685_v16, %v3718_v33  ;;  %v1344_v55 = vadd.f32 %v3689_v18, %v3718_v33  ;;  %v1352_v18 = vadd.f32 %v3695_v21, %v3722_v34 }
 0x1b2   : > { %v2735_v62 = vadd.f32 %v1658_v60, %v1320_v54  ;;  %v1660_v63 = vpop.f32.mrb[13].mxu0  ;;  %2654 = vmatprep.subr.bf16.mxu1 %v3131_v7 }
 0x1b3   : > { %v2737_v3 = vadd.f32 %v1660_v63, %v1322_v57  ;;  %v1662_v24 = vpop.f32.mrb[14].mxu0  ;;  %2011 = vmatprep.mubr.bf16.mxu1 %v1744_v59  ;;  %v1350_v63 = vadd.f32 %v3693_v20, %v3718_v33 }
 0x1b4   : > { %v2739_v1 = vadd.f32 %v1662_v24, %v1324_v8  ;;  %v1664_v31 = vpop.f32.mrb[15].mxu0  ;;  %2012 = vmatmul.mubr.bf16.gmra.mrb[40].mxu1 %v1743_v58  ;;  %v1719_v36 = vmax.f32 %v2735_v62, 0.0  ;;  %v1346_v58 = vadd.f32 %v3691_v19, %v3722_v34 }
 0x1b5   : > { %v2741_v35 = vadd.f32 %v1664_v31, %v1326_v9  ;;  %2655 = vmatpush3.bf16.msra.mxu1 %v3132_v61  ;;  %v1720_v38 = vmax.f32 %v2737_v3, 0.0 }
 0x1b6   : > { %v1721_v2 = vmax.f32 %v2739_v1, 0.0  ;;  %2656 = vmatprep.subr.bf16.mxu1 %v3133_v0  ;;  %v1354_v1 = vadd.f32 %v3697_v22, %v3718_v33  ;;  %v1362_v22 = vadd.f32 %v3703_v26, %v3722_v34 }
 0x1b7   : > { %v1722_v39 = vmax.f32 %v2741_v35, 0.0 }
 0x1b8   : > { %v1745_v41 = vpack.c.bf16 %v1721_v2, %v1719_v36 }
 0x1b9   : > { %v1746_v42 = vpack.c.bf16 %v1722_v39, %v1720_v38  ;;  %v1668_v43 = vpop.f32.mrb[16].mxu0  ;;  %2657 = vmatpush3.bf16.msra.mxu1 %v3134_v10  ;;  %v1356_v10 = vadd.f32 %v3699_v23, %v3722_v34  ;;  %v1360_v39 = vadd.f32 %v3701_v25, %v3718_v33 }
 0x1ba   : > { %v2743_v44 = vadd.f32 %v1668_v43, %v1330_v37  ;;  %v1670_v45 = vpop.f32.mrb[17].mxu0  ;;  %2658 = vmatprep.subr.bf16.mxu1 %v3135_v11 }
 0x1bb   : > { %v2745_v5 = vadd.f32 %v1670_v45, %v1332_v40  ;;  %v1672_v47 = vpop.f32.mrb[18].mxu0  ;;  %2021 = vmatprep.mubr.bf16.mxu1 %v1746_v42  ;;  %v1366_v45 = vadd.f32 %v3707_v28, %v3722_v34  ;;  %v3138_v28 = vld [vmem:[%s3919_s5 + $0x38] sm:$0xff]  }
 0x1bc   : > { %v2747_v13 = vadd.f32 %v1672_v47, %v1334_v12  ;;  %v1674_v48 = vpop.f32.mrb[19].mxu0  ;;  %2022 = vmatmul.mubr.bf16.gmra.mrb[44].mxu1 %v1745_v41  ;;  %v1723_v50 = vmax.f32 %v2743_v44, 0.0 }
 0x1bd   : > { %v2749_v49 = vadd.f32 %v1674_v48, %v1336_v46  ;;  %2659 = vmatpush3.bf16.msra.mxu1 %v3136_v4  ;;  %v1724_v14 = vmax.f32 %v2745_v5, 0.0  ;;  %v1364_v4 = vadd.f32 %v3705_v27, %v3718_v33  ;;  %v3137_v27 = vld [vmem:[%s3919_s5 + $0x78] sm:$0xff]   ;;  %v1787_v33 = vld [vmem:[%s3918_s4] sm:$0x3] }
 0x1be   : > { %v1725_v51 = vmax.f32 %v2747_v13, 0.0  ;;  %2660 = vmatprep.subr.bf16.mxu1 %v3137_v27  ;;  %v3830_v34 = vrot.slane %v1787_v33, %v452_v30 }
 0x1bf   : > { %v1726_v52 = vmax.f32 %v2749_v49, 0.0 }
 0x1c0   : > { %v1747_v54 = vpack.c.bf16 %v1725_v51, %v1723_v50 }
 0x1c1   : > { %v1748_v15 = vpack.c.bf16 %v1726_v52, %v1724_v14  ;;  %v1678_v7 = vpop.f32.mrb[20].mxu0  ;;  %2661 = vmatpush3.bf16.msra.mxu1 %v3138_v28  ;;  %v3834_v14 = vrot.slane %v1787_v33, %v456_v32 }
 0x1c2   : > { %v2751_v56 = vadd.f32 %v1678_v7, %v1340_v6  ;;  %v1680_v57 = vpop.f32.mrb[21].mxu0 }
 0x1c3   : > { %v2753_v59 = vadd.f32 %v1680_v57, %v1342_v53  ;;  %v1682_v60 = vpop.f32.mrb[22].mxu0  ;;  %2031 = vmatprep.mubr.bf16.mxu1 %v1748_v15 }
 0x1c4   : > { %v2755_v16 = vadd.f32 %v1682_v60, %v1344_v55  ;;  %v1684_v61 = vpop.f32.mrb[23].mxu0  ;;  %2032 = vmatmul.mubr.bf16.gmra.mrb[48].mxu1 %v1747_v54  ;;  %v1727_v62 = vmax.f32 %v2751_v56, 0.0 }
 0x1c5   : > { %v2757_v8 = vadd.f32 %v1684_v61, %v1346_v58  ;;  %v1728_v0 = vmax.f32 %v2753_v59, 0.0 }
 0x1c6   : > { %v1729_v17 = vmax.f32 %v2755_v16, 0.0 }
 0x1c7   : > { %v1730_v9 = vmax.f32 %v2757_v8, 0.0 }
 0x1c8   : > { %v1749_v3 = vpack.c.bf16 %v1729_v17, %v1727_v62 }
 0x1c9   : > { %v1750_v24 = vpack.c.bf16 %v1730_v9, %v1728_v0  ;;  %v1688_v19 = vpop.f32.mrb[24].mxu0 }
 0x1ca   : > { %v2759_v31 = vadd.f32 %v1688_v19, %v1350_v63  ;;  %v1690_v35 = vpop.f32.mrb[25].mxu0 }
 0x1cb   : > { %v2761_v36 = vadd.f32 %v1690_v35, %v1352_v18  ;;  %v1692_v2 = vpop.f32.mrb[26].mxu0  ;;  %2041 = vmatprep.mubr.bf16.mxu1 %v1750_v24 }
 0x1cc   : > { %v2763_v20 = vadd.f32 %v1692_v2, %v1354_v1  ;;  %v1694_v37 = vpop.f32.mrb[27].mxu0  ;;  %2042 = vmatmul.mubr.bf16.gmra.mrb[52].mxu1 %v1749_v3  ;;  %v1731_v38 = vmax.f32 %v2759_v31, 0.0 }
 0x1cd   : > { %v2765_v11 = vadd.f32 %v1694_v37, %v1356_v10  ;;  %v1732_v40 = vmax.f32 %v2761_v36, 0.0 }
 0x1ce   : > { %v1733_v21 = vmax.f32 %v2763_v20, 0.0 }
 0x1cf   : > { %v1734_v41 = vmax.f32 %v2765_v11, 0.0 }
 0x1d0   : > { %v1751_v42 = vpack.c.bf16 %v1733_v21, %v1731_v38 }
 0x1d1   : > { %v1752_v43 = vpack.c.bf16 %v1734_v41, %v1732_v40  ;;  %v1698_v23 = vpop.f32.mrb[28].mxu0 }
 0x1d2   : > { %v2767_v12 = vadd.f32 %v1698_v23, %v1360_v39  ;;  %v1700_v44 = vpop.f32.mrb[29].mxu0 }
 0x1d3   : > { %v2769_v46 = vadd.f32 %v1700_v44, %v1362_v22  ;;  %v1702_v5 = vpop.f32.mrb[30].mxu0  ;;  %2051 = vmatprep.mubr.bf16.mxu1 %v1752_v43 }
 0x1d4   : > { %v2771_v25 = vadd.f32 %v1702_v5, %v1364_v4  ;;  %v1704_v47 = vpop.f32.mrb[31].mxu0  ;;  %2052 = vmatmul.mubr.bf16.gmra.mrb[56].mxu1 %v1751_v42  ;;  %v1735_v48 = vmax.f32 %v2767_v12, 0.0 }
 0x1d5   : > { %v2773_v13 = vadd.f32 %v1704_v47, %v1366_v45  ;;  %v1736_v49 = vmax.f32 %v2769_v46, 0.0 }
 0x1d6   : > { %v1737_v26 = vmax.f32 %v2771_v25, 0.0 }
 0x1d7   : > { %v1738_v50 = vmax.f32 %v2773_v13, 0.0 }
 0x1d8   : > { %v1753_v51 = vpack.c.bf16 %v1737_v26, %v1735_v48 }
 0x1d9   : > { %v1754_v6 = vpack.c.bf16 %v1738_v50, %v1736_v49 }
 0x1db   : > { %2061 = vmatprep.mubr.bf16.mxu1 %v1754_v6 }
 0x1dc   : > { %2062 = vmatmul.mubr.bf16.gmra.mrb[60].mxu1 %v1753_v51 }
 0x277   : > { %v1993_v52 = vpop.f32.mrb[32].mxu1 }
 0x278   : > { %v1994_v53 = vadd.f32 %v1993_v52, %v3830_v34  ;;  %v1995_v54 = vpop.f32.mrb[33].mxu1 }
 0x279   : > { %v1996_v15 = vadd.f32 %v1995_v54, %v3834_v14  ;;  %v1997_v7 = vpop.f32.mrb[34].mxu1 }
 0x27a   : > { %v1998_v55 = vadd.f32 %v1997_v7, %v3830_v34  ;;  %v1999_v56 = vpop.f32.mrb[35].mxu1  ;;  %v2072_v58 = vmax.f32 %v1994_v53, 0.0 }
 0x27b   : > { %v2000_v57 = vadd.f32 %v1999_v56, %v3834_v14  ;;  %v2073_v30 = vmax.f32 %v1996_v15, 0.0 }
 0x27c   : > { %v2074_v59 = vmax.f32 %v1998_v55, 0.0 }
 0x27d   : > { %v2075_v60 = vmax.f32 %v2000_v57, 0.0 }
 0x27e   : > { %v2104_v16 = vpack.c.bf16 %v2074_v59, %v2072_v58 }
 0x27f   : > { %v2105_v29 = vpack.c.bf16 %v2075_v60, %v2073_v30  ;;  %v2003_v32 = vpop.f32.mrb[36].mxu1 }
 0x280   : > { %v2004_v61 = vadd.f32 %v2003_v32, %v3830_v34  ;;  %v2005_v8 = vpop.f32.mrb[37].mxu1 }
 0x281   : > { %v2006_v62 = vadd.f32 %v2005_v8, %v3834_v14  ;;  %v2007_v17 = vpop.f32.mrb[38].mxu1  ;;  %2287 = vmatprep.mubr.bf16.mxu1 %v2105_v29 }
 0x282   : > { %v2008_v63 = vadd.f32 %v2007_v17, %v3830_v34  ;;  %v2009_v0 = vpop.f32.mrb[39].mxu1  ;;  %2288 = vmatmul.mubr.bf16.vlgmr.msra.gmra.mrb[64].mxu1 %v2104_v16  ;;  %v2076_v18 = vmax.f32 %v2004_v61, 0.0 }
 0x283   : > { %v2010_v9 = vadd.f32 %v2009_v0, %v3834_v14  ;;  %v2077_v24 = vmax.f32 %v2006_v62, 0.0 }
 0x284   : > { %v2078_v3 = vmax.f32 %v2008_v63, 0.0 }
 0x285   : > { %v2079_v19 = vmax.f32 %v2010_v9, 0.0 }
 0x286   : > { %v2106_v1 = vpack.c.bf16 %v2078_v3, %v2076_v18 }
 0x287   : > { %v2107_v31 = vpack.c.bf16 %v2079_v19, %v2077_v24  ;;  %v2013_v35 = vpop.f32.mrb[40].mxu1 }
 0x288   : > { %v2014_v10 = vadd.f32 %v2013_v35, %v3830_v34  ;;  %v2015_v36 = vpop.f32.mrb[41].mxu1 }
 0x289   : > { %v2016_v2 = vadd.f32 %v2015_v36, %v3834_v14  ;;  %v2017_v20 = vpop.f32.mrb[42].mxu1  ;;  %2295 = vmatprep.mubr.bf16.mxu1 %v2107_v31 }
 0x28a   : > { %v2018_v37 = vadd.f32 %v2017_v20, %v3830_v34  ;;  %v2019_v11 = vpop.f32.mrb[43].mxu1  ;;  %2296 = vmatmul.mubr.bf16.gmra.mrb[68].mxu1 %v2106_v1  ;;  %v2080_v21 = vmax.f32 %v2014_v10, 0.0 }
 0x28b   : > { %v2020_v38 = vadd.f32 %v2019_v11, %v3834_v14  ;;  %v2081_v40 = vmax.f32 %v2016_v2, 0.0 }
 0x28c   : > { %v2082_v39 = vmax.f32 %v2018_v37, 0.0 }
 0x28d   : > { %v2083_v41 = vmax.f32 %v2020_v38, 0.0 }
 0x28e   : > { %v2108_v22 = vpack.c.bf16 %v2082_v39, %v2080_v21 }
 0x28f   : > { %v2109_v42 = vpack.c.bf16 %v2083_v41, %v2081_v40  ;;  %v2023_v43 = vpop.f32.mrb[44].mxu1 }
 0x290   : > { %v2024_v23 = vadd.f32 %v2023_v43, %v3830_v34  ;;  %v2025_v4 = vpop.f32.mrb[45].mxu1 }
 0x291   : > { %v2026_v12 = vadd.f32 %v2025_v4, %v3834_v14  ;;  %v2027_v44 = vpop.f32.mrb[46].mxu1  ;;  %2303 = vmatprep.mubr.bf16.mxu1 %v2109_v42 }
 0x292   : > { %v2028_v45 = vadd.f32 %v2027_v44, %v3830_v34  ;;  %v2029_v46 = vpop.f32.mrb[47].mxu1  ;;  %2304 = vmatmul.mubr.bf16.gmra.mrb[72].mxu1 %v2108_v22  ;;  %v2084_v25 = vmax.f32 %v2024_v23, 0.0 }
 0x293   : > { %v2030_v5 = vadd.f32 %v2029_v46, %v3834_v14  ;;  %v2085_v13 = vmax.f32 %v2026_v12, 0.0 }
 0x294   : > { %v2086_v47 = vmax.f32 %v2028_v45, 0.0 }
 0x295   : > { %v2087_v48 = vmax.f32 %v2030_v5, 0.0 }
 0x296   : > { %v2110_v26 = vpack.c.bf16 %v2086_v47, %v2084_v25  ;;  %v3872_v47 = vld [vmem:[%s3920_s6] ss:$0 sm:$0xff] }
 0x297   : > { %v2111_v49 = vpack.c.bf16 %v2087_v48, %v2085_v13  ;;  %v2033_v50 = vpop.f32.mrb[48].mxu1 }
 0x298   : > { %v2034_v51 = vadd.f32 %v2033_v50, %v3830_v34  ;;  %v2035_v6 = vpop.f32.mrb[49].mxu1 }
 0x299   : > { %v2036_v27 = vadd.f32 %v2035_v6, %v3834_v14  ;;  %v2037_v28 = vpop.f32.mrb[50].mxu1  ;;  %2311 = vmatprep.mubr.bf16.mxu1 %v2111_v49 }
 0x29a   : > { %v2038_v33 = vadd.f32 %v2037_v28, %v3830_v34  ;;  %v2039_v52 = vpop.f32.mrb[51].mxu1  ;;  %2312 = vmatmul.mubr.bf16.gmra.mrb[76].mxu1 %v2110_v26  ;;  %v2088_v54 = vmax.f32 %v2034_v51, 0.0 }
 0x29b   : > { %v2040_v53 = vadd.f32 %v2039_v52, %v3834_v14  ;;  %v2089_v7 = vmax.f32 %v2036_v27, 0.0 }
 0x29c   : > { %v2090_v15 = vmax.f32 %v2038_v33, 0.0 }
 0x29d   : > { %v2091_v55 = vmax.f32 %v2040_v53, 0.0 }
 0x29e   : > { %v2112_v56 = vpack.c.bf16 %v2090_v15, %v2088_v54 }
 0x29f   : > { %v2113_v57 = vpack.c.bf16 %v2091_v55, %v2089_v7  ;;  %v2043_v58 = vpop.f32.mrb[52].mxu1 }
 0x2a0   : > { %v2044_v59 = vadd.f32 %v2043_v58, %v3830_v34  ;;  %v2045_v30 = vpop.f32.mrb[53].mxu1 }
 0x2a1   : > { %v2046_v60 = vadd.f32 %v2045_v30, %v3834_v14  ;;  %v2047_v16 = vpop.f32.mrb[54].mxu1  ;;  %2319 = vmatprep.mubr.bf16.mxu1 %v2113_v57 }
 0x2a2   : > { %v2048_v29 = vadd.f32 %v2047_v16, %v3830_v34  ;;  %v2049_v32 = vpop.f32.mrb[55].mxu1  ;;  %2320 = vmatmul.mubr.bf16.gmra.mrb[80].mxu1 %v2112_v56  ;;  %v2092_v8 = vmax.f32 %v2044_v59, 0.0 }
 0x2a3   : > { %v2050_v61 = vadd.f32 %v2049_v32, %v3834_v14  ;;  %v2093_v17 = vmax.f32 %v2046_v60, 0.0 }
 0x2a4   : > { %v2094_v62 = vmax.f32 %v2048_v29, 0.0 }
 0x2a5   : > { %v2095_v63 = vmax.f32 %v2050_v61, 0.0 }
 0x2a6   : > { %v2114_v0 = vpack.c.bf16 %v2094_v62, %v2092_v8 }
 0x2a7   : > { %v2115_v9 = vpack.c.bf16 %v2095_v63, %v2093_v17  ;;  %v2053_v18 = vpop.f32.mrb[56].mxu1 }
 0x2a8   : > { %v2054_v3 = vadd.f32 %v2053_v18, %v3830_v34  ;;  %v2055_v24 = vpop.f32.mrb[57].mxu1 }
 0x2a9   : > { %v2056_v19 = vadd.f32 %v2055_v24, %v3834_v14  ;;  %v2057_v1 = vpop.f32.mrb[58].mxu1  ;;  %2327 = vmatprep.mubr.bf16.mxu1 %v2115_v9 }
 0x2aa   : > { %v2058_v31 = vadd.f32 %v2057_v1, %v3830_v34  ;;  %v2059_v35 = vpop.f32.mrb[59].mxu1  ;;  %2328 = vmatmul.mubr.bf16.gmra.mrb[84].mxu1 %v2114_v0  ;;  %v2096_v36 = vmax.f32 %v2054_v3, 0.0 }
 0x2ab   : > { %v2060_v10 = vadd.f32 %v2059_v35, %v3834_v14  ;;  %v2097_v20 = vmax.f32 %v2056_v19, 0.0 }
 0x2ac   : > { %v2098_v2 = vmax.f32 %v2058_v31, 0.0 }
 0x2ad   : > { %v2099_v37 = vmax.f32 %v2060_v10, 0.0 }
 0x2ae   : > { %v2116_v11 = vpack.c.bf16 %v2098_v2, %v2096_v36 }
 0x2af   : > { %v2117_v38 = vpack.c.bf16 %v2099_v37, %v2097_v20  ;;  %v2063_v21 = vpop.f32.mrb[60].mxu1 }
 0x2b0   : > { %v2064_v39 = vadd.f32 %v2063_v21, %v3830_v34  ;;  %v2065_v40 = vpop.f32.mrb[61].mxu1 }
 0x2b1   : > { %v2066_v41 = vadd.f32 %v2065_v40, %v3834_v14  ;;  %v2067_v22 = vpop.f32.mrb[62].mxu1  ;;  %2335 = vmatprep.mubr.bf16.mxu1 %v2117_v38 }
 0x2b2   : > { %v2068_v42 = vadd.f32 %v2067_v22, %v3830_v34  ;;  %v2069_v43 = vpop.f32.mrb[63].mxu1  ;;  %2336 = vmatmul.mubr.bf16.gmra.mrb[88].mxu1 %v2116_v11  ;;  %v2100_v4 = vmax.f32 %v2064_v39, 0.0 }
 0x2b3   : > { %v2070_v23 = vadd.f32 %v2069_v43, %v3834_v14  ;;  %v2101_v44 = vmax.f32 %v2066_v41, 0.0 }
 0x2b4   : > { %v2102_v12 = vmax.f32 %v2068_v42, 0.0 }
 0x2b5   : > { %v2103_v45 = vmax.f32 %v2070_v23, 0.0 }
 0x2b6   : > { %v2118_v46 = vpack.c.bf16 %v2102_v12, %v2100_v4 }
 0x2b7   : > { %v2119_v5 = vpack.c.bf16 %v2103_v45, %v2101_v44 }
 0x2b9   : > { %2343 = vmatprep.mubr.bf16.mxu1 %v2119_v5 }
 0x2ba   : > { %2344 = vmatmul.mubr.bf16.gmra.mrb[92].mxu1 %v2118_v46 }
 0x355   : > { %v2662_v25 = vpop.f32.mrb[64].mxu1 }
 0x356   : > { %v2663_v34 = vpop.f32.mrb[65].mxu1 }
 0x357   : > { %v2664_v13 = vadd.f32 %v2663_v34, %v2662_v25  ;;  %v2665_v48 = vpop.f32.mrb[66].mxu1 }
 0x358   : > { %v2666_v14 = vpop.f32.mrb[67].mxu1 }
 0x359   : > { %v2290_v26 = vadd.f32 %v2664_v13, %v3872_v47  ;;  %v2667_v49 = vadd.f32 %v2666_v14, %v2665_v48 }
 0x35b   : > { %2352 = vst [vmem:[%s3877_s27] sm:$0xff] %v2290_v26  ;;  %v2293_v50 = vadd.f32 %v2667_v49, %v3872_v47 }
 0x35d   : > { %2353 = vst [vmem:[%s3877_s27 + $0x8] sm:$0xff] %v2293_v50  ;;  %v2668_v51 = vpop.f32.mrb[68].mxu1 }
 0x35e   : > { %v2669_v6 = vpop.f32.mrb[69].mxu1 }
 0x35f   : > { %v2670_v27 = vadd.f32 %v2669_v6, %v2668_v51  ;;  %v2671_v28 = vpop.f32.mrb[70].mxu1 }
 0x360   : > { %v2672_v33 = vpop.f32.mrb[71].mxu1 }
 0x361   : > { %v2298_v52 = vadd.f32 %v2670_v27, %v3872_v47  ;;  %v2673_v53 = vadd.f32 %v2672_v33, %v2671_v28 }
 0x363   : > { %2354 = vst [vmem:[%s3877_s27 + $0x10] sm:$0xff] %v2298_v52  ;;  %v2301_v54 = vadd.f32 %v2673_v53, %v3872_v47 }
 0x365   : > { %2355 = vst [vmem:[%s3877_s27 + $0x18] sm:$0xff] %v2301_v54  ;;  %v2674_v15 = vpop.f32.mrb[72].mxu1 }
 0x366   : > { %v2675_v7 = vpop.f32.mrb[73].mxu1 }
 0x367   : > { %v2676_v55 = vadd.f32 %v2675_v7, %v2674_v15  ;;  %v2677_v56 = vpop.f32.mrb[74].mxu1 }
 0x368   : > { %v2678_v57 = vpop.f32.mrb[75].mxu1 }
 0x369   : > { %v2306_v58 = vadd.f32 %v2676_v55, %v3872_v47  ;;  %v2679_v59 = vadd.f32 %v2678_v57, %v2677_v56 }
 0x36b   : > { %2356 = vst [vmem:[%s3877_s27 + $0x20] sm:$0xff] %v2306_v58  ;;  %v2309_v30 = vadd.f32 %v2679_v59, %v3872_v47 }
 0x36d   : > { %2357 = vst [vmem:[%s3877_s27 + $0x28] sm:$0xff] %v2309_v30  ;;  %v2680_v60 = vpop.f32.mrb[76].mxu1 }
 0x36e   : > { %v2681_v16 = vpop.f32.mrb[77].mxu1 }
 0x36f   : > { %v2682_v29 = vadd.f32 %v2681_v16, %v2680_v60  ;;  %v2683_v32 = vpop.f32.mrb[78].mxu1 }
 0x370   : > { %v2684_v61 = vpop.f32.mrb[79].mxu1 }
 0x371   : > { %v2314_v8 = vadd.f32 %v2682_v29, %v3872_v47  ;;  %v2685_v62 = vadd.f32 %v2684_v61, %v2683_v32 }
 0x373   : > { %2358 = vst [vmem:[%s3877_s27 + $0x30] sm:$0xff] %v2314_v8  ;;  %v2317_v17 = vadd.f32 %v2685_v62, %v3872_v47 }
 0x375   : > { %2359 = vst [vmem:[%s3877_s27 + $0x38] sm:$0xff] %v2317_v17  ;;  %v2686_v63 = vpop.f32.mrb[80].mxu1 }
 0x376   : > { %v2687_v0 = vpop.f32.mrb[81].mxu1 }
 0x377   : > { %v2688_v9 = vadd.f32 %v2687_v0, %v2686_v63  ;;  %v2689_v18 = vpop.f32.mrb[82].mxu1 }
 0x378   : > { %v2690_v3 = vpop.f32.mrb[83].mxu1 }
 0x379   : > { %v2322_v24 = vadd.f32 %v2688_v9, %v3872_v47  ;;  %v2691_v19 = vadd.f32 %v2690_v3, %v2689_v18 }
 0x37b   : > { %2360 = vst [vmem:[%s3877_s27 + $0x40] sm:$0xff] %v2322_v24  ;;  %v2325_v1 = vadd.f32 %v2691_v19, %v3872_v47 }
 0x37d   : > { %2361 = vst [vmem:[%s3877_s27 + $0x48] sm:$0xff] %v2325_v1  ;;  %v2692_v31 = vpop.f32.mrb[84].mxu1 }
 0x37e   : > { %v2693_v35 = vpop.f32.mrb[85].mxu1 }
 0x37f   : > { %v2694_v10 = vadd.f32 %v2693_v35, %v2692_v31  ;;  %v2695_v36 = vpop.f32.mrb[86].mxu1 }
 0x380   : > { %v2696_v2 = vpop.f32.mrb[87].mxu1 }
 0x381   : > { %v2330_v20 = vadd.f32 %v2694_v10, %v3872_v47  ;;  %v2697_v37 = vadd.f32 %v2696_v2, %v2695_v36 }
 0x383   : > { %2362 = vst [vmem:[%s3877_s27 + $0x50] sm:$0xff] %v2330_v20  ;;  %v2333_v11 = vadd.f32 %v2697_v37, %v3872_v47 }
 0x385   : > { %2363 = vst [vmem:[%s3877_s27 + $0x58] sm:$0xff] %v2333_v11  ;;  %v2698_v38 = vpop.f32.mrb[88].mxu1 }
 0x386   : > { %v2699_v21 = vpop.f32.mrb[89].mxu1 }
 0x387   : > { %v2700_v39 = vadd.f32 %v2699_v21, %v2698_v38  ;;  %v2701_v40 = vpop.f32.mrb[90].mxu1 }
 0x388   : > { %v2702_v41 = vpop.f32.mrb[91].mxu1 }
 0x389   : > { %v2338_v22 = vadd.f32 %v2700_v39, %v3872_v47  ;;  %v2703_v42 = vadd.f32 %v2702_v41, %v2701_v40 }
 0x38b   : > { %2364 = vst [vmem:[%s3877_s27 + $0x60] sm:$0xff] %v2338_v22  ;;  %v2341_v43 = vadd.f32 %v2703_v42, %v3872_v47 }
 0x38d   : > { %2365 = vst [vmem:[%s3877_s27 + $0x68] sm:$0xff] %v2341_v43  ;;  %v2704_v23 = vpop.f32.mrb[92].mxu1 }
 0x38e   : > { %v2705_v4 = vpop.f32.mrb[93].mxu1 }
 0x38f   : > { %v2706_v12 = vadd.f32 %v2705_v4, %v2704_v23  ;;  %v2707_v44 = vpop.f32.mrb[94].mxu1 }
 0x390   : > { %v2708_v45 = vpop.f32.mrb[95].mxu1 }
 0x391   : > { %v2346_v46 = vadd.f32 %v2706_v12, %v3872_v47  ;;  %v2709_v5 = vadd.f32 %v2708_v45, %v2707_v44 }
 0x393   : > { %2366 = vst [vmem:[%s3877_s27 + $0x70] sm:$0xff] %v2346_v46  ;;  %v2349_v25 = vadd.f32 %v2709_v5, %v3872_v47 }
 0x395   : > { %2367 = vst [vmem:[%s3877_s27 + $0x78] sm:$0xff] %v2349_v25 }
 0x396 PF: > { %s17_s24 = sadd.s32 1, %s3145_s24  }
 0x397   : > { %p14_p4 = scmp.ge.s32.totalorder %s17_s24, 4  }
 0x399   :  { %16 = sbr.rel (!%p14_p4) target bundleno = 1 (0x1), region = 78 }

</bundles_post_ra>
